<compile_context>
chip_gen: v5e
topology: v5e:2x2
jax: 0.10.0
libtpu: 0.0.40
codegen_flags: <defaults>
</compile_context>

<pallas_src>
import jax
import jax.numpy as jnp
from jax import lax
from jax.experimental import pallas as pl
from jax.experimental.pallas import tpu as pltpu


# ----------------------------------------------------------------------------
# Tiled linear layer:  y = x @ w + b      (x: (M,K), w: (K,N), b: (1,N))
# ----------------------------------------------------------------------------
def _linear_kernel(x_ref, w_ref, b_ref, o_ref, acc_ref):
    @pl.when(pl.program_id(2) == 0)
    def _():
        acc_ref[...] = jnp.zeros_like(acc_ref)

    acc_ref[...] += jnp.dot(x_ref[...], w_ref[...],
                            preferred_element_type=jnp.float32)

    @pl.when(pl.program_id(2) == pl.num_programs(2) - 1)
    def _():
        o_ref[...] = (acc_ref[...] + b_ref[...]).astype(o_ref.dtype)


def _pick_tile(dim, target):
    """Largest tile <= target that divides `dim`, preferring multiples of 128
    (lane/MXU aligned); falls back to the full dim (always legal)."""
    if dim <= target:
        return dim
    for t in range(target, 0, -128):
        if dim % t == 0:
            return t
    return dim


def pallas_linear(x, w, b, *, bm=256, bn=256, bk=512):
    M, K = x.shape
    N = w.shape[1]
    tm = _pick_tile(M, bm)
    tn = _pick_tile(N, bn)
    tk = _pick_tile(K, bk)
    grid = (M // tm, N // tn, K // tk)
    return pl.pallas_call(
        _linear_kernel,
        out_shape=jax.ShapeDtypeStruct((M, N), x.dtype),
        grid_spec=pltpu.PrefetchScalarGridSpec(
            num_scalar_prefetch=0,
            grid=grid,
            in_specs=[
                pl.BlockSpec((tm, tk), lambda i, j, k: (i, k)),
                pl.BlockSpec((tk, tn), lambda i, j, k: (k, j)),
                pl.BlockSpec((1, tn), lambda i, j, k: (0, j)),
            ],
            out_specs=pl.BlockSpec((tm, tn), lambda i, j, k: (i, j)),
            scratch_shapes=[pltpu.VMEM((tm, tn), jnp.float32)],
        ),
        compiler_params=pltpu.CompilerParams(
            dimension_semantics=("parallel", "parallel", "arbitrary")),
    )(x, w, b.reshape(1, N))


# ----------------------------------------------------------------------------
# Attention core.  One grid step = one batch row (all heads).
#   qkv row layout (matches torch reshape(B,N,3,H,Dh)):
#     q_h = cols [      h*Dh, (h+1)*Dh)
#     k_h = cols [C   + h*Dh, ...)
#     v_h = cols [2C  + h*Dh, ...)
# ----------------------------------------------------------------------------
def _make_attn_kernel(num_heads, head_dim, dim, scale):
    def _attn_kernel(qkv_ref, out_ref, attn_ref):
        qkv_row = qkv_ref[0]                                # (N, 3C)
        for h in range(num_heads):
            lo = h * head_dim
            q = qkv_row[:, lo:lo + head_dim]                # (N, Dh)
            k = qkv_row[:, dim + lo:dim + lo + head_dim]    # (N, Dh)
            v = qkv_row[:, 2 * dim + lo:2 * dim + lo + head_dim]

            # Fold scale into q (N*Dh mults instead of N*N).
            qs = q * scale
            # NT matmul: contract on Dh of both operands -> no XLU transpose.
            s = lax.dot_general(qs, k, (((1,), (1,)), ((), ())),
                                preferred_element_type=jnp.float32)  # (N, N)
            s = s - jnp.max(s, axis=-1, keepdims=True)
            e = jnp.exp(s)
            # Per-row reciprocal on the EUP instead of a VALU divide.
            p = e * pl.reciprocal(jnp.sum(e, axis=-1, keepdims=True),
                                  approx=True)

            attn_ref[0, h] = p.astype(attn_ref.dtype)
            o = jnp.dot(p.astype(v.dtype), v,
                        preferred_element_type=jnp.float32)          # (N, Dh)
            # Write directly into the (B, N, C) layout (head-major columns).
            out_ref[0, :, lo:lo + head_dim] = o.astype(out_ref.dtype)

    return _attn_kernel


def pallas_attention(qkv, *, num_heads, scale):
    """qkv: (B, N, 3C) -> (out (B, N, C), attn (B, H, N, N))."""
    B, N, threeC = qkv.shape
    C = threeC // 3
    Dh = C // num_heads

    out, attn = pl.pallas_call(
        _make_attn_kernel(num_heads, Dh, C, scale),
        out_shape=(
            jax.ShapeDtypeStruct((B, N, C), qkv.dtype),
            # attn kept in f32 to exactly match the torch module's return.
            jax.ShapeDtypeStruct((B, num_heads, N, N), jnp.float32),
        ),
        grid=(B,),
        in_specs=[pl.BlockSpec((1, N, threeC), lambda b: (b, 0, 0))],
        out_specs=(
            pl.BlockSpec((1, N, C), lambda b: (b, 0, 0)),
            pl.BlockSpec((1, num_heads, N, N), lambda b: (b, 0, 0, 0)),
        ),
        compiler_params=pltpu.CompilerParams(
            dimension_semantics=("parallel",)),
    )(qkv)
    return out, attn


# ----------------------------------------------------------------------------
# Full module forward
# ----------------------------------------------------------------------------
def attention_forward(x, params, num_heads):
    """x: (B, N, C) -> (out (B, N, C), attn (B, H, N, N))"""
    B, N, C = x.shape
    Dh = C // num_heads
    scale = Dh ** (-0.5)

    # qkv linear (qkv_bias=False -> zero bias).
    qkv = pallas_linear(x.reshape(B * N, C), params["w_qkv"], params["b_qkv"])
    qkv = qkv.reshape(B, N, 3 * C)   # leading-dim reshape only, no HBM transpose

    out, attn = pallas_attention(qkv, num_heads=num_heads, scale=scale)

    # proj linear (with bias).
    out = pallas_linear(out.reshape(B * N, C),
                        params["w_proj"], params["b_proj"]).reshape(B, N, C)

    # attn_drop / proj_drop have p=0.0 -> identity.
    return out, attn


# ----------------------------------------------------------------------------
# Pure-JAX reference (mirrors the PyTorch forward exactly) for verification
# ----------------------------------------------------------------------------
def attention_reference(x, params, num_heads):
    B, N, C = x.shape
    H = num_heads
    Dh = C // H
    scale = Dh ** (-0.5)
    qkv = x.reshape(B * N, C) @ params["w_qkv"] + params["b_qkv"]
    qkv = qkv.reshape(B, N, 3, H, Dh).transpose(2, 0, 3, 1, 4)
    q, k, v = qkv[0], qkv[1], qkv[2]
    attn = jnp.einsum("bhqd,bhkd->bhqk", q, k) * scale
    attn = attn - jnp.max(attn, axis=-1, keepdims=True)
    attn = jax.nn.softmax(attn, axis=-1)
    out = jnp.einsum("bhqk,bhkd->bhqd", attn, v)
    out = out.transpose(0, 2, 1, 3).reshape(B * N, C)
    out = (out @ params["w_proj"] + params["b_proj"]).reshape(B, N, C)
    return out, attn


if __name__ == "__main__":
    # Small shapes consistent with the module: B=2, N=16 tokens, C=64, 8 heads.
    B, N, C, H = 2, 16, 64, 8

    key = jax.random.PRNGKey(0)
    k_x, k_wqkv, k_wproj, k_bproj = jax.random.split(key, 4)

    x = jax.random.normal(k_x, (B, N, C), dtype=jnp.float32)

    # Parameters stored transposed vs torch so that y = x @ w + b.
    # qkv_bias=False -> zero qkv bias.
    params = {
        "w_qkv": 0.02 * jax.random.normal(k_wqkv, (C, 3 * C), dtype=jnp.float32),
        "b_qkv": jnp.zeros((3 * C,), dtype=jnp.float32),
        "w_proj": 0.02 * jax.random.normal(k_wproj, (C, C), dtype=jnp.float32),
        "b_proj": 0.01 * jax.random.normal(k_bproj, (C,), dtype=jnp.float32),
    }

    fwd = jax.jit(attention_forward, static_argnums=2)
    out, attn = fwd(x, params, H)
    out = jax.block_until_ready(out)
    attn = jax.block_until_ready(attn)

    out_ref, attn_ref = attention_reference(x, params, H)

    assert out.shape == (B, N, C)
    assert attn.shape == (B, H, N, N)
    # Tolerance accounts for the EUP approximate reciprocal in the softmax
    # normalization (relative error well below 1e-3 in practice).
    assert jnp.allclose(attn, attn_ref, atol=2e-3, rtol=2e-3)
    assert jnp.allclose(out, out_ref, atol=2e-3, rtol=2e-3)

    print("KERNEL_OK")
</pallas_src>

<mosaic_0001>
module attributes {stable_mosaic.version = 11 : i64} {
  func.func @_linear_kernel(%arg0: i32, %arg1: i32, %arg2: i32, %arg3: memref<32x64xf32, #tpu.memory_space<vmem>>, %arg4: memref<64x192xf32, #tpu.memory_space<vmem>>, %arg5: memref<1x192xf32, #tpu.memory_space<vmem>>, %arg6: memref<32x192xf32, #tpu.memory_space<vmem>>, %arg7: memref<32x192xf32, #tpu.memory_space<vmem>>) attributes {dimension_semantics = [#tpu.dimension_semantics<parallel>, #tpu.dimension_semantics<parallel>, #tpu.dimension_semantics<arbitrary>], iteration_bounds = array<i64: 1, 1, 1>, scalar_prefetch = 0 : i64, scratch_operands = 1 : i64, tpu.core_type = #tpu.core_type<tc>, window_params = [{transform_indices = @transform_0, window_bounds = array<i64: 32, 64>}, {transform_indices = @transform_1, window_bounds = array<i64: 64, 192>}, {transform_indices = @transform_2, window_bounds = array<i64: 1, 192>}, {transform_indices = @transform_3, window_bounds = array<i64: 32, 192>}]} {
    %c0_i32 = arith.constant 0 : i32
    %0 = arith.cmpi eq, %arg2, %c0_i32 : i32
    %1 = arith.extui %0 : i1 to i32
    %c0_i32_0 = arith.constant 0 : i32
    %2 = arith.cmpi ne, %1, %c0_i32_0 : i32
    scf.if %2 {
      %cst_10 = arith.constant 0.000000e+00 : f32
      %12 = vector.broadcast %cst_10 : f32 to vector<32x192xf32>
      %c0_11 = arith.constant 0 : index
      %c0_12 = arith.constant 0 : index
      %13 = vector.load %arg7[%c0_11, %c0_12] : memref<32x192xf32, #tpu.memory_space<vmem>>, vector<32x192xf32>
      tpu.vector_store %arg7[%c0_11, %c0_12], %12 {strides = array<i32>} : memref<32x192xf32, #tpu.memory_space<vmem>>, vector<32x192xf32>,
    } else {
    }
    %c0 = arith.constant 0 : index
    %c0_1 = arith.constant 0 : index
    %3 = vector.load %arg7[%c0, %c0_1] : memref<32x192xf32, #tpu.memory_space<vmem>>, vector<32x192xf32>
    %c0_2 = arith.constant 0 : index
    %c0_3 = arith.constant 0 : index
    %4 = vector.load %arg3[%c0_2, %c0_3] : memref<32x64xf32, #tpu.memory_space<vmem>>, vector<32x64xf32>
    %c0_4 = arith.constant 0 : index
    %c0_5 = arith.constant 0 : index
    %5 = vector.load %arg4[%c0_4, %c0_5] : memref<64x192xf32, #tpu.memory_space<vmem>>, vector<64x192xf32>
    %cst = arith.constant dense<0.000000e+00> : vector<32x192xf32>
    %6 = tpu.matmul %4, %5, %cst {dimension_numbers = #tpu.dot_dimension_numbers<[1], [0], [0], [1], [0, 0, 1, 1], [], []>} : vector<32x64xf32>, vector<64x192xf32>, vector<32x192xf32> -> vector<32x192xf32>
    %7 = arith.addf %3, %6 : vector<32x192xf32>
    %c0_6 = arith.constant 0 : index
    %c0_7 = arith.constant 0 : index
    %8 = vector.load %arg7[%c0_6, %c0_7] : memref<32x192xf32, #tpu.memory_space<vmem>>, vector<32x192xf32>
    tpu.vector_store %arg7[%c0_6, %c0_7], %7 {strides = array<i32>} : memref<32x192xf32, #tpu.memory_space<vmem>>, vector<32x192xf32>,
    %c0_i32_8 = arith.constant 0 : i32
    %9 = arith.cmpi eq, %arg2, %c0_i32_8 : i32
    %10 = arith.extui %9 : i1 to i32
    %c0_i32_9 = arith.constant 0 : i32
    %11 = arith.cmpi ne, %10, %c0_i32_9 : i32
    scf.if %11 {
      %c0_10 = arith.constant 0 : index
      %c0_11 = arith.constant 0 : index
      %12 = vector.load %arg7[%c0_10, %c0_11] : memref<32x192xf32, #tpu.memory_space<vmem>>, vector<32x192xf32>
      %c0_12 = arith.constant 0 : index
      %c0_13 = arith.constant 0 : index
      %13 = vector.load %arg5[%c0_12, %c0_13] : memref<1x192xf32, #tpu.memory_space<vmem>>, vector<1x192xf32>
      %14 = vector.broadcast %13 : vector<1x192xf32> to vector<32x192xf32>
      %15 = arith.addf %12, %14 : vector<32x192xf32>
      %c0_14 = arith.constant 0 : index
      %c0_15 = arith.constant 0 : index
      %16 = vector.load %arg6[%c0_14, %c0_15] : memref<32x192xf32, #tpu.memory_space<vmem>>, vector<32x192xf32>
      tpu.vector_store %arg6[%c0_14, %c0_15], %15 {strides = array<i32>} : memref<32x192xf32, #tpu.memory_space<vmem>>, vector<32x192xf32>,
    } else {
    }
    return
  }
  func.func @transform_0(%arg0: i32, %arg1: i32, %arg2: i32) -> (i32, i32) {
    %c0_i32 = arith.constant 0 : i32
    return %arg0, %arg2 : i32, i32
  }
  func.func @transform_1(%arg0: i32, %arg1: i32, %arg2: i32) -> (i32, i32) {
    %c0_i32 = arith.constant 0 : i32
    return %arg2, %arg1 : i32, i32
  }
  func.func @transform_2(%arg0: i32, %arg1: i32, %arg2: i32) -> (i32, i32) {
    %c0_i32 = arith.constant 0 : i32
    %c0_i32_0 = arith.constant 0 : i32
    return %c0_i32, %arg1 : i32, i32
  }
  func.func @transform_3(%arg0: i32, %arg1: i32, %arg2: i32) -> (i32, i32) {
    %c0_i32 = arith.constant 0 : i32
    return %arg0, %arg1 : i32, i32
  }
}

module attributes {stable_mosaic.version = 11 : i64} {
  func.func @_linear_kernel(%arg0: i32, %arg1: i32, %arg2: i32, %arg3: memref<32x64xf32, #tpu.memory_space<vmem>>, %arg4: memref<64x64xf32, #tpu.memory_space<vmem>>, %arg5: memref<1x64xf32, #tpu.memory_space<vmem>>, %arg6: memref<32x64xf32, #tpu.memory_space<vmem>>, %arg7: memref<32x64xf32, #tpu.memory_space<vmem>>) attributes {dimension_semantics = [#tpu.dimension_semantics<parallel>, #tpu.dimension_semantics<parallel>, #tpu.dimension_semantics<arbitrary>], iteration_bounds = array<i64: 1, 1, 1>, scalar_prefetch = 0 : i64, scratch_operands = 1 : i64, tpu.core_type = #tpu.core_type<tc>, window_params = [{transform_indices = @transform_0, window_bounds = array<i64: 32, 64>}, {transform_indices = @transform_1, window_bounds = array<i64: 64, 64>}, {transform_indices = @transform_2, window_bounds = array<i64: 1, 64>}, {transform_indices = @transform_3, window_bounds = array<i64: 32, 64>}]} {
    %c0_i32 = arith.constant 0 : i32
    %0 = arith.cmpi eq, %arg2, %c0_i32 : i32
    %1 = arith.extui %0 : i1 to i32
    %c0_i32_0 = arith.constant 0 : i32
    %2 = arith.cmpi ne, %1, %c0_i32_0 : i32
    scf.if %2 {
      %cst_10 = arith.constant 0.000000e+00 : f32
      %12 = vector.broadcast %cst_10 : f32 to vector<32x64xf32>
      %c0_11 = arith.constant 0 : index
      %c0_12 = arith.constant 0 : index
      %13 = vector.load %arg7[%c0_11, %c0_12] : memref<32x64xf32, #tpu.memory_space<vmem>>, vector<32x64xf32>
      tpu.vector_store %arg7[%c0_11, %c0_12], %12 {strides = array<i32>} : memref<32x64xf32, #tpu.memory_space<vmem>>, vector<32x64xf32>,
    } else {
    }
    %c0 = arith.constant 0 : index
    %c0_1 = arith.constant 0 : index
    %3 = vector.load %arg7[%c0, %c0_1] : memref<32x64xf32, #tpu.memory_space<vmem>>, vector<32x64xf32>
    %c0_2 = arith.constant 0 : index
    %c0_3 = arith.constant 0 : index
    %4 = vector.load %arg3[%c0_2, %c0_3] : memref<32x64xf32, #tpu.memory_space<vmem>>, vector<32x64xf32>
    %c0_4 = arith.constant 0 : index
    %c0_5 = arith.constant 0 : index
    %5 = vector.load %arg4[%c0_4, %c0_5] : memref<64x64xf32, #tpu.memory_space<vmem>>, vector<64x64xf32>
    %cst = arith.constant dense<0.000000e+00> : vector<32x64xf32>
    %6 = tpu.matmul %4, %5, %cst {dimension_numbers = #tpu.dot_dimension_numbers<[1], [0], [0], [1], [0, 0, 1, 1], [], []>} : vector<32x64xf32>, vector<64x64xf32>, vector<32x64xf32> -> vector<32x64xf32>
    %7 = arith.addf %3, %6 : vector<32x64xf32>
    %c0_6 = arith.constant 0 : index
    %c0_7 = arith.constant 0 : index
    %8 = vector.load %arg7[%c0_6, %c0_7] : memref<32x64xf32, #tpu.memory_space<vmem>>, vector<32x64xf32>
    tpu.vector_store %arg7[%c0_6, %c0_7], %7 {strides = array<i32>} : memref<32x64xf32, #tpu.memory_space<vmem>>, vector<32x64xf32>,
    %c0_i32_8 = arith.constant 0 : i32
    %9 = arith.cmpi eq, %arg2, %c0_i32_8 : i32
    %10 = arith.extui %9 : i1 to i32
    %c0_i32_9 = arith.constant 0 : i32
    %11 = arith.cmpi ne, %10, %c0_i32_9 : i32
    scf.if %11 {
      %c0_10 = arith.constant 0 : index
      %c0_11 = arith.constant 0 : index
      %12 = vector.load %arg7[%c0_10, %c0_11] : memref<32x64xf32, #tpu.memory_space<vmem>>, vector<32x64xf32>
      %c0_12 = arith.constant 0 : index
      %c0_13 = arith.constant 0 : index
      %13 = vector.load %arg5[%c0_12, %c0_13] : memref<1x64xf32, #tpu.memory_space<vmem>>, vector<1x64xf32>
      %14 = vector.broadcast %13 : vector<1x64xf32> to vector<32x64xf32>
      %15 = arith.addf %12, %14 : vector<32x64xf32>
      %c0_14 = arith.constant 0 : index
      %c0_15 = arith.constant 0 : index
      %16 = vector.load %arg6[%c0_14, %c0_15] : memref<32x64xf32, #tpu.memory_space<vmem>>, vector<32x64xf32>
      tpu.vector_store %arg6[%c0_14, %c0_15], %15 {strides = array<i32>} : memref<32x64xf32, #tpu.memory_space<vmem>>, vector<32x64xf32>,
    } else {
    }
    return
  }
  func.func @transform_0(%arg0: i32, %arg1: i32, %arg2: i32) -> (i32, i32) {
    %c0_i32 = arith.constant 0 : i32
    return %arg0, %arg2 : i32, i32
  }
  func.func @transform_1(%arg0: i32, %arg1: i32, %arg2: i32) -> (i32, i32) {
    %c0_i32 = arith.constant 0 : i32
    return %arg2, %arg1 : i32, i32
  }
  func.func @transform_2(%arg0: i32, %arg1: i32, %arg2: i32) -> (i32, i32) {
    %c0_i32 = arith.constant 0 : i32
    %c0_i32_0 = arith.constant 0 : i32
    return %c0_i32, %arg1 : i32, i32
  }
  func.func @transform_3(%arg0: i32, %arg1: i32, %arg2: i32) -> (i32, i32) {
    %c0_i32 = arith.constant 0 : i32
    return %arg0, %arg1 : i32, i32
  }
}

module attributes {stable_mosaic.version = 11 : i64} {
  func.func @_attn_kernel(%arg0: i32, %arg1: memref<1x16x192xf32, #tpu.memory_space<vmem>>, %arg2: memref<1x16x64xf32, #tpu.memory_space<vmem>>, %arg3: memref<1x8x16x16xf32, #tpu.memory_space<vmem>>) attributes {dimension_semantics = [#tpu.dimension_semantics<parallel>], iteration_bounds = array<i64: 2>, scalar_prefetch = 0 : i64, scratch_operands = 0 : i64, tpu.core_type = #tpu.core_type<tc>, window_params = [{transform_indices = @transform_0, window_bounds = array<i64: 1, 16, 192>}, {transform_indices = @transform_1, window_bounds = array<i64: 1, 16, 64>}, {transform_indices = @transform_2, window_bounds = array<i64: 1, 8, 16, 16>}]} {
    %c0 = arith.constant 0 : index
    %c0_0 = arith.constant 0 : index
    %c0_1 = arith.constant 0 : index
    %0 = vector.load %arg1[%c0, %c0_0, %c0_1] : memref<1x16x192xf32, #tpu.memory_space<vmem>>, vector<1x16x192xf32>
    %1 = vector.shape_cast %0 : vector<1x16x192xf32> to vector<16x192xf32>
    %2 = vector.extract_strided_slice %1 {offsets = [0, 0], sizes = [16, 8], strides = [1, 1]} : vector<16x192xf32> to vector<16x8xf32>
    %3 = vector.extract_strided_slice %1 {offsets = [0, 64], sizes = [16, 8], strides = [1, 1]} : vector<16x192xf32> to vector<16x8xf32>
    %4 = vector.extract_strided_slice %1 {offsets = [0, 128], sizes = [16, 8], strides = [1, 1]} : vector<16x192xf32> to vector<16x8xf32>
    %cst = arith.constant 0.353553385 : f32
    %5 = vector.broadcast %cst : f32 to vector<16x8xf32>
    %6 = arith.mulf %2, %5 : vector<16x8xf32>
    %cst_2 = arith.constant dense<0.000000e+00> : vector<16x16xf32>
    %7 = tpu.matmul %6, %3, %cst_2 {dimension_numbers = #tpu.dot_dimension_numbers<[1], [1], [0], [0], [0, 0, 1, 0], [], []>} : vector<16x8xf32>, vector<16x8xf32>, vector<16x16xf32> -> vector<16x16xf32>
    %cst_3 = arith.constant dense<0xFF800000> : vector<16xf32>
    %8 = vector.multi_reduction <maximumf>, %7, %cst_3 [1] : vector<16x16xf32> to vector<16xf32>
    %9 = vector.shape_cast %8 : vector<16xf32> to vector<16x1xf32>
    %10 = vector.broadcast %9 : vector<16x1xf32> to vector<16x16xf32>
    %11 = arith.subf %7, %10 : vector<16x16xf32>
    %12 = math.exp %11 : vector<16x16xf32>
    %cst_4 = arith.constant dense<0.000000e+00> : vector<16xf32>
    %13 = vector.multi_reduction <add>, %12, %cst_4 [1] : vector<16x16xf32> to vector<16xf32>
    %14 = vector.shape_cast %13 : vector<16xf32> to vector<16x1xf32>
    %15 = tpu.reciprocal %14 {approx = true} : vector<16x1xf32> -> vector<16x1xf32>
    %16 = vector.broadcast %15 : vector<16x1xf32> to vector<16x16xf32>
    %17 = arith.mulf %12, %16 : vector<16x16xf32>
    %c0_5 = arith.constant 0 : index
    %c0_6 = arith.constant 0 : index
    %c0_7 = arith.constant 0 : index
    %c0_8 = arith.constant 0 : index
    %18 = vector.load %arg3[%c0_5, %c0_6, %c0_7, %c0_8] : memref<1x8x16x16xf32, #tpu.memory_space<vmem>>, vector<1x1x16x16xf32>
    %19 = vector.shape_cast %18 : vector<1x1x16x16xf32> to vector<16x16xf32>
    %20 = vector.shape_cast %17 : vector<16x16xf32> to vector<1x1x16x16xf32>
    tpu.vector_store %arg3[%c0_5, %c0_6, %c0_7, %c0_8], %20 {strides = array<i32>} : memref<1x8x16x16xf32, #tpu.memory_space<vmem>>, vector<1x1x16x16xf32>,
    %cst_9 = arith.constant dense<0.000000e+00> : vector<16x8xf32>
    %21 = tpu.matmul %17, %4, %cst_9 {dimension_numbers = #tpu.dot_dimension_numbers<[1], [0], [0], [1], [0, 0, 1, 1], [], []>} : vector<16x16xf32>, vector<16x8xf32>, vector<16x8xf32> -> vector<16x8xf32>
    %c0_10 = arith.constant 0 : index
    %c0_11 = arith.constant 0 : index
    %c0_12 = arith.constant 0 : index
    %22 = vector.load %arg2[%c0_10, %c0_11, %c0_12] : memref<1x16x64xf32, #tpu.memory_space<vmem>>, vector<1x16x8xf32>
    %23 = vector.shape_cast %22 : vector<1x16x8xf32> to vector<16x8xf32>
    %24 = vector.shape_cast %21 : vector<16x8xf32> to vector<1x16x8xf32>
    tpu.vector_store %arg2[%c0_10, %c0_11, %c0_12], %24 {strides = array<i32>} : memref<1x16x64xf32, #tpu.memory_space<vmem>>, vector<1x16x8xf32>,
    %25 = vector.extract_strided_slice %1 {offsets = [0, 8], sizes = [16, 8], strides = [1, 1]} : vector<16x192xf32> to vector<16x8xf32>
    %26 = vector.extract_strided_slice %1 {offsets = [0, 72], sizes = [16, 8], strides = [1, 1]} : vector<16x192xf32> to vector<16x8xf32>
    %27 = vector.extract_strided_slice %1 {offsets = [0, 136], sizes = [16, 8], strides = [1, 1]} : vector<16x192xf32> to vector<16x8xf32>
    %cst_13 = arith.constant 0.353553385 : f32
    %28 = vector.broadcast %cst_13 : f32 to vector<16x8xf32>
    %29 = arith.mulf %25, %28 : vector<16x8xf32>
    %cst_14 = arith.constant dense<0.000000e+00> : vector<16x16xf32>
    %30 = tpu.matmul %29, %26, %cst_14 {dimension_numbers = #tpu.dot_dimension_numbers<[1], [1], [0], [0], [0, 0, 1, 0], [], []>} : vector<16x8xf32>, vector<16x8xf32>, vector<16x16xf32> -> vector<16x16xf32>
    %cst_15 = arith.constant dense<0xFF800000> : vector<16xf32>
    %31 = vector.multi_reduction <maximumf>, %30, %cst_15 [1] : vector<16x16xf32> to vector<16xf32>
    %32 = vector.shape_cast %31 : vector<16xf32> to vector<16x1xf32>
    %33 = vector.broadcast %32 : vector<16x1xf32> to vector<16x16xf32>
    %34 = arith.subf %30, %33 : vector<16x16xf32>
    %35 = math.exp %34 : vector<16x16xf32>
    %cst_16 = arith.constant dense<0.000000e+00> : vector<16xf32>
    %36 = vector.multi_reduction <add>, %35, %cst_16 [1] : vector<16x16xf32> to vector<16xf32>
    %37 = vector.shape_cast %36 : vector<16xf32> to vector<16x1xf32>
    %38 = tpu.reciprocal %37 {approx = true} : vector<16x1xf32> -> vector<16x1xf32>
    %39 = vector.broadcast %38 : vector<16x1xf32> to vector<16x16xf32>
    %40 = arith.mulf %35, %39 : vector<16x16xf32>
    %c0_17 = arith.constant 0 : index
    %c1 = arith.constant 1 : index
    %c0_18 = arith.constant 0 : index
    %c0_19 = arith.constant 0 : index
    %41 = vector.load %arg3[%c0_17, %c1, %c0_18, %c0_19] : memref<1x8x16x16xf32, #tpu.memory_space<vmem>>, vector<1x1x16x16xf32>
    %42 = vector.shape_cast %41 : vector<1x1x16x16xf32> to vector<16x16xf32>
    %43 = vector.shape_cast %40 : vector<16x16xf32> to vector<1x1x16x16xf32>
    tpu.vector_store %arg3[%c0_17, %c1, %c0_18, %c0_19], %43 {strides = array<i32>} : memref<1x8x16x16xf32, #tpu.memory_space<vmem>>, vector<1x1x16x16xf32>,
    %cst_20 = arith.constant dense<0.000000e+00> : vector<16x8xf32>
    %44 = tpu.matmul %40, %27, %cst_20 {dimension_numbers = #tpu.dot_dimension_numbers<[1], [0], [0], [1], [0, 0, 1, 1], [], []>} : vector<16x16xf32>, vector<16x8xf32>, vector<16x8xf32> -> vector<16x8xf32>
    %c0_21 = arith.constant 0 : index
    %c0_22 = arith.constant 0 : index
    %c8 = arith.constant 8 : index
    %45 = vector.load %arg2[%c0_21, %c0_22, %c8] : memref<1x16x64xf32, #tpu.memory_space<vmem>>, vector<1x16x8xf32>
    %46 = vector.shape_cast %45 : vector<1x16x8xf32> to vector<16x8xf32>
    %47 = vector.shape_cast %44 : vector<16x8xf32> to vector<1x16x8xf32>
    tpu.vector_store %arg2[%c0_21, %c0_22, %c8], %47 {strides = array<i32>} : memref<1x16x64xf32, #tpu.memory_space<vmem>>, vector<1x16x8xf32>,
    %48 = vector.extract_strided_slice %1 {offsets = [0, 16], sizes = [16, 8], strides = [1, 1]} : vector<16x192xf32> to vector<16x8xf32>
    %49 = vector.extract_strided_slice %1 {offsets = [0, 80], sizes = [16, 8], strides = [1, 1]} : vector<16x192xf32> to vector<16x8xf32>
    %50 = vector.extract_strided_slice %1 {offsets = [0, 144], sizes = [16, 8], strides = [1, 1]} : vector<16x192xf32> to vector<16x8xf32>
    %cst_23 = arith.constant 0.353553385 : f32
    %51 = vector.broadcast %cst_23 : f32 to vector<16x8xf32>
    %52 = arith.mulf %48, %51 : vector<16x8xf32>
    %cst_24 = arith.constant dense<0.000000e+00> : vector<16x16xf32>
    %53 = tpu.matmul %52, %49, %cst_24 {dimension_numbers = #tpu.dot_dimension_numbers<[1], [1], [0], [0], [0, 0, 1, 0], [], []>} : vector<16x8xf32>, vector<16x8xf32>, vector<16x16xf32> -> vector<16x16xf32>
    %cst_25 = arith.constant dense<0xFF800000> : vector<16xf32>
    %54 = vector.multi_reduction <maximumf>, %53, %cst_25 [1] : vector<16x16xf32> to vector<16xf32>
    %55 = vector.shape_cast %54 : vector<16xf32> to vector<16x1xf32>
    %56 = vector.broadcast %55 : vector<16x1xf32> to vector<16x16xf32>
    %57 = arith.subf %53, %56 : vector<16x16xf32>
    %58 = math.exp %57 : vector<16x16xf32>
    %cst_26 = arith.constant dense<0.000000e+00> : vector<16xf32>
    %59 = vector.multi_reduction <add>, %58, %cst_26 [1] : vector<16x16xf32> to vector<16xf32>
    %60 = vector.shape_cast %59 : vector<16xf32> to vector<16x1xf32>
    %61 = tpu.reciprocal %60 {approx = true} : vector<16x1xf32> -> vector<16x1xf32>
    %62 = vector.broadcast %61 : vector<16x1xf32> to vector<16x16xf32>
    %63 = arith.mulf %58, %62 : vector<16x16xf32>
    %c0_27 = arith.constant 0 : index
    %c2 = arith.constant 2 : index
    %c0_28 = arith.constant 0 : index
    %c0_29 = arith.constant 0 : index
    %64 = vector.load %arg3[%c0_27, %c2, %c0_28, %c0_29] : memref<1x8x16x16xf32, #tpu.memory_space<vmem>>, vector<1x1x16x16xf32>
    %65 = vector.shape_cast %64 : vector<1x1x16x16xf32> to vector<16x16xf32>
    %66 = vector.shape_cast %63 : vector<16x16xf32> to vector<1x1x16x16xf32>
    tpu.vector_store %arg3[%c0_27, %c2, %c0_28, %c0_29], %66 {strides = array<i32>} : memref<1x8x16x16xf32, #tpu.memory_space<vmem>>, vector<1x1x16x16xf32>,
    %cst_30 = arith.constant dense<0.000000e+00> : vector<16x8xf32>
    %67 = tpu.matmul %63, %50, %cst_30 {dimension_numbers = #tpu.dot_dimension_numbers<[1], [0], [0], [1], [0, 0, 1, 1], [], []>} : vector<16x16xf32>, vector<16x8xf32>, vector<16x8xf32> -> vector<16x8xf32>
    %c0_31 = arith.constant 0 : index
    %c0_32 = arith.constant 0 : index
    %c16 = arith.constant 16 : index
    %68 = vector.load %arg2[%c0_31, %c0_32, %c16] : memref<1x16x64xf32, #tpu.memory_space<vmem>>, vector<1x16x8xf32>
    %69 = vector.shape_cast %68 : vector<1x16x8xf32> to vector<16x8xf32>
    %70 = vector.shape_cast %67 : vector<16x8xf32> to vector<1x16x8xf32>
    tpu.vector_store %arg2[%c0_31, %c0_32, %c16], %70 {strides = array<i32>} : memref<1x16x64xf32, #tpu.memory_space<vmem>>, vector<1x16x8xf32>,
    %71 = vector.extract_strided_slice %1 {offsets = [0, 24], sizes = [16, 8], strides = [1, 1]} : vector<16x192xf32> to vector<16x8xf32>
    %72 = vector.extract_strided_slice %1 {offsets = [0, 88], sizes = [16, 8], strides = [1, 1]} : vector<16x192xf32> to vector<16x8xf32>
    %73 = vector.extract_strided_slice %1 {offsets = [0, 152], sizes = [16, 8], strides = [1, 1]} : vector<16x192xf32> to vector<16x8xf32>
    %cst_33 = arith.constant 0.353553385 : f32
    %74 = vector.broadcast %cst_33 : f32 to vector<16x8xf32>
    %75 = arith.mulf %71, %74 : vector<16x8xf32>
    %cst_34 = arith.constant dense<0.000000e+00> : vector<16x16xf32>
    %76 = tpu.matmul %75, %72, %cst_34 {dimension_numbers = #tpu.dot_dimension_numbers<[1], [1], [0], [0], [0, 0, 1, 0], [], []>} : vector<16x8xf32>, vector<16x8xf32>, vector<16x16xf32> -> vector<16x16xf32>
    %cst_35 = arith.constant dense<0xFF800000> : vector<16xf32>
    %77 = vector.multi_reduction <maximumf>, %76, %cst_35 [1] : vector<16x16xf32> to vector<16xf32>
    %78 = vector.shape_cast %77 : vector<16xf32> to vector<16x1xf32>
    %79 = vector.broadcast %78 : vector<16x1xf32> to vector<16x16xf32>
    %80 = arith.subf %76, %79 : vector<16x16xf32>
    %81 = math.exp %80 : vector<16x16xf32>
    %cst_36 = arith.constant dense<0.000000e+00> : vector<16xf32>
    %82 = vector.multi_reduction <add>, %81, %cst_36 [1] : vector<16x16xf32> to vector<16xf32>
    %83 = vector.shape_cast %82 : vector<16xf32> to vector<16x1xf32>
    %84 = tpu.reciprocal %83 {approx = true} : vector<16x1xf32> -> vector<16x1xf32>
    %85 = vector.broadcast %84 : vector<16x1xf32> to vector<16x16xf32>
    %86 = arith.mulf %81, %85 : vector<16x16xf32>
    %c0_37 = arith.constant 0 : index
    %c3 = arith.constant 3 : index
    %c0_38 = arith.constant 0 : index
    %c0_39 = arith.constant 0 : index
    %87 = vector.load %arg3[%c0_37, %c3, %c0_38, %c0_39] : memref<1x8x16x16xf32, #tpu.memory_space<vmem>>, vector<1x1x16x16xf32>
    %88 = vector.shape_cast %87 : vector<1x1x16x16xf32> to vector<16x16xf32>
    %89 = vector.shape_cast %86 : vector<16x16xf32> to vector<1x1x16x16xf32>
    tpu.vector_store %arg3[%c0_37, %c3, %c0_38, %c0_39], %89 {strides = array<i32>} : memref<1x8x16x16xf32, #tpu.memory_space<vmem>>, vector<1x1x16x16xf32>,
    %cst_40 = arith.constant dense<0.000000e+00> : vector<16x8xf32>
    %90 = tpu.matmul %86, %73, %cst_40 {dimension_numbers = #tpu.dot_dimension_numbers<[1], [0], [0], [1], [0, 0, 1, 1], [], []>} : vector<16x16xf32>, vector<16x8xf32>, vector<16x8xf32> -> vector<16x8xf32>
    %c0_41 = arith.constant 0 : index
    %c0_42 = arith.constant 0 : index
    %c24 = arith.constant 24 : index
    %91 = vector.load %arg2[%c0_41, %c0_42, %c24] : memref<1x16x64xf32, #tpu.memory_space<vmem>>, vector<1x16x8xf32>
    %92 = vector.shape_cast %91 : vector<1x16x8xf32> to vector<16x8xf32>
    %93 = vector.shape_cast %90 : vector<16x8xf32> to vector<1x16x8xf32>
    tpu.vector_store %arg2[%c0_41, %c0_42, %c24], %93 {strides = array<i32>} : memref<1x16x64xf32, #tpu.memory_space<vmem>>, vector<1x16x8xf32>,
    %94 = vector.extract_strided_slice %1 {offsets = [0, 32], sizes = [16, 8], strides = [1, 1]} : vector<16x192xf32> to vector<16x8xf32>
    %95 = vector.extract_strided_slice %1 {offsets = [0, 96], sizes = [16, 8], strides = [1, 1]} : vector<16x192xf32> to vector<16x8xf32>
    %96 = vector.extract_strided_slice %1 {offsets = [0, 160], sizes = [16, 8], strides = [1, 1]} : vector<16x192xf32> to vector<16x8xf32>
    %cst_43 = arith.constant 0.353553385 : f32
    %97 = vector.broadcast %cst_43 : f32 to vector<16x8xf32>
    %98 = arith.mulf %94, %97 : vector<16x8xf32>
    %cst_44 = arith.constant dense<0.000000e+00> : vector<16x16xf32>
    %99 = tpu.matmul %98, %95, %cst_44 {dimension_numbers = #tpu.dot_dimension_numbers<[1], [1], [0], [0], [0, 0, 1, 0], [], []>} : vector<16x8xf32>, vector<16x8xf32>, vector<16x16xf32> -> vector<16x16xf32>
    %cst_45 = arith.constant dense<0xFF800000> : vector<16xf32>
    %100 = vector.multi_reduction <maximumf>, %99, %cst_45 [1] : vector<16x16xf32> to vector<16xf32>
    %101 = vector.shape_cast %100 : vector<16xf32> to vector<16x1xf32>
    %102 = vector.broadcast %101 : vector<16x1xf32> to vector<16x16xf32>
    %103 = arith.subf %99, %102 : vector<16x16xf32>
    %104 = math.exp %103 : vector<16x16xf32>
    %cst_46 = arith.constant dense<0.000000e+00> : vector<16xf32>
    %105 = vector.multi_reduction <add>, %104, %cst_46 [1] : vector<16x16xf32> to vector<16xf32>
    %106 = vector.shape_cast %105 : vector<16xf32> to vector<16x1xf32>
    %107 = tpu.reciprocal %106 {approx = true} : vector<16x1xf32> -> vector<16x1xf32>
    %108 = vector.broadcast %107 : vector<16x1xf32> to vector<16x16xf32>
    %109 = arith.mulf %104, %108 : vector<16x16xf32>
    %c0_47 = arith.constant 0 : index
    %c4 = arith.constant 4 : index
    %c0_48 = arith.constant 0 : index
    %c0_49 = arith.constant 0 : index
    %110 = vector.load %arg3[%c0_47, %c4, %c0_48, %c0_49] : memref<1x8x16x16xf32, #tpu.memory_space<vmem>>, vector<1x1x16x16xf32>
    %111 = vector.shape_cast %110 : vector<1x1x16x16xf32> to vector<16x16xf32>
    %112 = vector.shape_cast %109 : vector<16x16xf32> to vector<1x1x16x16xf32>
    tpu.vector_store %arg3[%c0_47, %c4, %c0_48, %c0_49], %112 {strides = array<i32>} : memref<1x8x16x16xf32, #tpu.memory_space<vmem>>, vector<1x1x16x16xf32>,
    %cst_50 = arith.constant dense<0.000000e+00> : vector<16x8xf32>
    %113 = tpu.matmul %109, %96, %cst_50 {dimension_numbers = #tpu.dot_dimension_numbers<[1], [0], [0], [1], [0, 0, 1, 1], [], []>} : vector<16x16xf32>, vector<16x8xf32>, vector<16x8xf32> -> vector<16x8xf32>
    %c0_51 = arith.constant 0 : index
    %c0_52 = arith.constant 0 : index
    %c32 = arith.constant 32 : index
    %114 = vector.load %arg2[%c0_51, %c0_52, %c32] : memref<1x16x64xf32, #tpu.memory_space<vmem>>, vector<1x16x8xf32>
    %115 = vector.shape_cast %114 : vector<1x16x8xf32> to vector<16x8xf32>
    %116 = vector.shape_cast %113 : vector<16x8xf32> to vector<1x16x8xf32>
    tpu.vector_store %arg2[%c0_51, %c0_52, %c32], %116 {strides = array<i32>} : memref<1x16x64xf32, #tpu.memory_space<vmem>>, vector<1x16x8xf32>,
    %117 = vector.extract_strided_slice %1 {offsets = [0, 40], sizes = [16, 8], strides = [1, 1]} : vector<16x192xf32> to vector<16x8xf32>
    %118 = vector.extract_strided_slice %1 {offsets = [0, 104], sizes = [16, 8], strides = [1, 1]} : vector<16x192xf32> to vector<16x8xf32>
    %119 = vector.extract_strided_slice %1 {offsets = [0, 168], sizes = [16, 8], strides = [1, 1]} : vector<16x192xf32> to vector<16x8xf32>
    %cst_53 = arith.constant 0.353553385 : f32
    %120 = vector.broadcast %cst_53 : f32 to vector<16x8xf32>
    %121 = arith.mulf %117, %120 : vector<16x8xf32>
    %cst_54 = arith.constant dense<0.000000e+00> : vector<16x16xf32>
    %122 = tpu.matmul %121, %118, %cst_54 {dimension_numbers = #tpu.dot_dimension_numbers<[1], [1], [0], [0], [0, 0, 1, 0], [], []>} : vector<16x8xf32>, vector<16x8xf32>, vector<16x16xf32> -> vector<16x16xf32>
    %cst_55 = arith.constant dense<0xFF800000> : vector<16xf32>
    %123 = vector.multi_reduction <maximumf>, %122, %cst_55 [1] : vector<16x16xf32> to vector<16xf32>
    %124 = vector.shape_cast %123 : vector<16xf32> to vector<16x1xf32>
    %125 = vector.broadcast %124 : vector<16x1xf32> to vector<16x16xf32>
    %126 = arith.subf %122, %125 : vector<16x16xf32>
    %127 = math.exp %126 : vector<16x16xf32>
    %cst_56 = arith.constant dense<0.000000e+00> : vector<16xf32>
    %128 = vector.multi_reduction <add>, %127, %cst_56 [1] : vector<16x16xf32> to vector<16xf32>
    %129 = vector.shape_cast %128 : vector<16xf32> to vector<16x1xf32>
    %130 = tpu.reciprocal %129 {approx = true} : vector<16x1xf32> -> vector<16x1xf32>
    %131 = vector.broadcast %130 : vector<16x1xf32> to vector<16x16xf32>
    %132 = arith.mulf %127, %131 : vector<16x16xf32>
    %c0_57 = arith.constant 0 : index
    %c5 = arith.constant 5 : index
    %c0_58 = arith.constant 0 : index
    %c0_59 = arith.constant 0 : index
    %133 = vector.load %arg3[%c0_57, %c5, %c0_58, %c0_59] : memref<1x8x16x16xf32, #tpu.memory_space<vmem>>, vector<1x1x16x16xf32>
    %134 = vector.shape_cast %133 : vector<1x1x16x16xf32> to vector<16x16xf32>
    %135 = vector.shape_cast %132 : vector<16x16xf32> to vector<1x1x16x16xf32>
    tpu.vector_store %arg3[%c0_57, %c5, %c0_58, %c0_59], %135 {strides = array<i32>} : memref<1x8x16x16xf32, #tpu.memory_space<vmem>>, vector<1x1x16x16xf32>,
    %cst_60 = arith.constant dense<0.000000e+00> : vector<16x8xf32>
    %136 = tpu.matmul %132, %119, %cst_60 {dimension_numbers = #tpu.dot_dimension_numbers<[1], [0], [0], [1], [0, 0, 1, 1], [], []>} : vector<16x16xf32>, vector<16x8xf32>, vector<16x8xf32> -> vector<16x8xf32>
    %c0_61 = arith.constant 0 : index
    %c0_62 = arith.constant 0 : index
    %c40 = arith.constant 40 : index
    %137 = vector.load %arg2[%c0_61, %c0_62, %c40] : memref<1x16x64xf32, #tpu.memory_space<vmem>>, vector<1x16x8xf32>
    %138 = vector.shape_cast %137 : vector<1x16x8xf32> to vector<16x8xf32>
    %139 = vector.shape_cast %136 : vector<16x8xf32> to vector<1x16x8xf32>
    tpu.vector_store %arg2[%c0_61, %c0_62, %c40], %139 {strides = array<i32>} : memref<1x16x64xf32, #tpu.memory_space<vmem>>, vector<1x16x8xf32>,
    %140 = vector.extract_strided_slice %1 {offsets = [0, 48], sizes = [16, 8], strides = [1, 1]} : vector<16x192xf32> to vector<16x8xf32>
    %141 = vector.extract_strided_slice %1 {offsets = [0, 112], sizes = [16, 8], strides = [1, 1]} : vector<16x192xf32> to vector<16x8xf32>
    %142 = vector.extract_strided_slice %1 {offsets = [0, 176], sizes = [16, 8], strides = [1, 1]} : vector<16x192xf32> to vector<16x8xf32>
    %cst_63 = arith.constant 0.353553385 : f32
    %143 = vector.broadcast %cst_63 : f32 to vector<16x8xf32>
    %144 = arith.mulf %140, %143 : vector<16x8xf32>
    %cst_64 = arith.constant dense<0.000000e+00> : vector<16x16xf32>
    %145 = tpu.matmul %144, %141, %cst_64 {dimension_numbers = #tpu.dot_dimension_numbers<[1], [1], [0], [0], [0, 0, 1, 0], [], []>} : vector<16x8xf32>, vector<16x8xf32>, vector<16x16xf32> -> vector<16x16xf32>
    %cst_65 = arith.constant dense<0xFF800000> : vector<16xf32>
    %146 = vector.multi_reduction <maximumf>, %145, %cst_65 [1] : vector<16x16xf32> to vector<16xf32>
    %147 = vector.shape_cast %146 : vector<16xf32> to vector<16x1xf32>
    %148 = vector.broadcast %147 : vector<16x1xf32> to vector<16x16xf32>
    %149 = arith.subf %145, %148 : vector<16x16xf32>
    %150 = math.exp %149 : vector<16x16xf32>
    %cst_66 = arith.constant dense<0.000000e+00> : vector<16xf32>
    %151 = vector.multi_reduction <add>, %150, %cst_66 [1] : vector<16x16xf32> to vector<16xf32>
    %152 = vector.shape_cast %151 : vector<16xf32> to vector<16x1xf32>
    %153 = tpu.reciprocal %152 {approx = true} : vector<16x1xf32> -> vector<16x1xf32>
    %154 = vector.broadcast %153 : vector<16x1xf32> to vector<16x16xf32>
    %155 = arith.mulf %150, %154 : vector<16x16xf32>
    %c0_67 = arith.constant 0 : index
    %c6 = arith.constant 6 : index
    %c0_68 = arith.constant 0 : index
    %c0_69 = arith.constant 0 : index
    %156 = vector.load %arg3[%c0_67, %c6, %c0_68, %c0_69] : memref<1x8x16x16xf32, #tpu.memory_space<vmem>>, vector<1x1x16x16xf32>
    %157 = vector.shape_cast %156 : vector<1x1x16x16xf32> to vector<16x16xf32>
    %158 = vector.shape_cast %155 : vector<16x16xf32> to vector<1x1x16x16xf32>
    tpu.vector_store %arg3[%c0_67, %c6, %c0_68, %c0_69], %158 {strides = array<i32>} : memref<1x8x16x16xf32, #tpu.memory_space<vmem>>, vector<1x1x16x16xf32>,
    %cst_70 = arith.constant dense<0.000000e+00> : vector<16x8xf32>
    %159 = tpu.matmul %155, %142, %cst_70 {dimension_numbers = #tpu.dot_dimension_numbers<[1], [0], [0], [1], [0, 0, 1, 1], [], []>} : vector<16x16xf32>, vector<16x8xf32>, vector<16x8xf32> -> vector<16x8xf32>
    %c0_71 = arith.constant 0 : index
    %c0_72 = arith.constant 0 : index
    %c48 = arith.constant 48 : index
    %160 = vector.load %arg2[%c0_71, %c0_72, %c48] : memref<1x16x64xf32, #tpu.memory_space<vmem>>, vector<1x16x8xf32>
    %161 = vector.shape_cast %160 : vector<1x16x8xf32> to vector<16x8xf32>
    %162 = vector.shape_cast %159 : vector<16x8xf32> to vector<1x16x8xf32>
    tpu.vector_store %arg2[%c0_71, %c0_72, %c48], %162 {strides = array<i32>} : memref<1x16x64xf32, #tpu.memory_space<vmem>>, vector<1x16x8xf32>,
    %163 = vector.extract_strided_slice %1 {offsets = [0, 56], sizes = [16, 8], strides = [1, 1]} : vector<16x192xf32> to vector<16x8xf32>
    %164 = vector.extract_strided_slice %1 {offsets = [0, 120], sizes = [16, 8], strides = [1, 1]} : vector<16x192xf32> to vector<16x8xf32>
    %165 = vector.extract_strided_slice %1 {offsets = [0, 184], sizes = [16, 8], strides = [1, 1]} : vector<16x192xf32> to vector<16x8xf32>
    %cst_73 = arith.constant 0.353553385 : f32
    %166 = vector.broadcast %cst_73 : f32 to vector<16x8xf32>
    %167 = arith.mulf %163, %166 : vector<16x8xf32>
    %cst_74 = arith.constant dense<0.000000e+00> : vector<16x16xf32>
    %168 = tpu.matmul %167, %164, %cst_74 {dimension_numbers = #tpu.dot_dimension_numbers<[1], [1], [0], [0], [0, 0, 1, 0], [], []>} : vector<16x8xf32>, vector<16x8xf32>, vector<16x16xf32> -> vector<16x16xf32>
    %cst_75 = arith.constant dense<0xFF800000> : vector<16xf32>
    %169 = vector.multi_reduction <maximumf>, %168, %cst_75 [1] : vector<16x16xf32> to vector<16xf32>
    %170 = vector.shape_cast %169 : vector<16xf32> to vector<16x1xf32>
    %171 = vector.broadcast %170 : vector<16x1xf32> to vector<16x16xf32>
    %172 = arith.subf %168, %171 : vector<16x16xf32>
    %173 = math.exp %172 : vector<16x16xf32>
    %cst_76 = arith.constant dense<0.000000e+00> : vector<16xf32>
    %174 = vector.multi_reduction <add>, %173, %cst_76 [1] : vector<16x16xf32> to vector<16xf32>
    %175 = vector.shape_cast %174 : vector<16xf32> to vector<16x1xf32>
    %176 = tpu.reciprocal %175 {approx = true} : vector<16x1xf32> -> vector<16x1xf32>
    %177 = vector.broadcast %176 : vector<16x1xf32> to vector<16x16xf32>
    %178 = arith.mulf %173, %177 : vector<16x16xf32>
    %c0_77 = arith.constant 0 : index
    %c7 = arith.constant 7 : index
    %c0_78 = arith.constant 0 : index
    %c0_79 = arith.constant 0 : index
    %179 = vector.load %arg3[%c0_77, %c7, %c0_78, %c0_79] : memref<1x8x16x16xf32, #tpu.memory_space<vmem>>, vector<1x1x16x16xf32>
    %180 = vector.shape_cast %179 : vector<1x1x16x16xf32> to vector<16x16xf32>
    %181 = vector.shape_cast %178 : vector<16x16xf32> to vector<1x1x16x16xf32>
    tpu.vector_store %arg3[%c0_77, %c7, %c0_78, %c0_79], %181 {strides = array<i32>} : memref<1x8x16x16xf32, #tpu.memory_space<vmem>>, vector<1x1x16x16xf32>,
    %cst_80 = arith.constant dense<0.000000e+00> : vector<16x8xf32>
    %182 = tpu.matmul %178, %165, %cst_80 {dimension_numbers = #tpu.dot_dimension_numbers<[1], [0], [0], [1], [0, 0, 1, 1], [], []>} : vector<16x16xf32>, vector<16x8xf32>, vector<16x8xf32> -> vector<16x8xf32>
    %c0_81 = arith.constant 0 : index
    %c0_82 = arith.constant 0 : index
    %c56 = arith.constant 56 : index
    %183 = vector.load %arg2[%c0_81, %c0_82, %c56] : memref<1x16x64xf32, #tpu.memory_space<vmem>>, vector<1x16x8xf32>
    %184 = vector.shape_cast %183 : vector<1x16x8xf32> to vector<16x8xf32>
    %185 = vector.shape_cast %182 : vector<16x8xf32> to vector<1x16x8xf32>
    tpu.vector_store %arg2[%c0_81, %c0_82, %c56], %185 {strides = array<i32>} : memref<1x16x64xf32, #tpu.memory_space<vmem>>, vector<1x16x8xf32>,
    return
  }
  func.func @transform_0(%arg0: i32) -> (i32, i32, i32) {
    %c0_i32 = arith.constant 0 : i32
    %c0_i32_0 = arith.constant 0 : i32
    %c0_i32_1 = arith.constant 0 : i32
    return %arg0, %c0_i32, %c0_i32_0 : i32, i32, i32
  }
  func.func @transform_1(%arg0: i32) -> (i32, i32, i32) {
    %c0_i32 = arith.constant 0 : i32
    %c0_i32_0 = arith.constant 0 : i32
    %c0_i32_1 = arith.constant 0 : i32
    return %arg0, %c0_i32, %c0_i32_0 : i32, i32, i32
  }
  func.func @transform_2(%arg0: i32) -> (i32, i32, i32, i32) {
    %c0_i32 = arith.constant 0 : i32
    %c0_i32_0 = arith.constant 0 : i32
    %c0_i32_1 = arith.constant 0 : i32
    %c0_i32_2 = arith.constant 0 : i32
    return %arg0, %c0_i32, %c0_i32_0, %c0_i32_1 : i32, i32, i32, i32
  }
}

</mosaic_0001>

<bundles_post_ra>
// kernel: attention_forward.3
= control target key start
LH: loop header
LB: loop body
LE: loop exit
PB: predicated region body
PF: predicated region fallthrough
CT: control target
= control target key end

     0   :  { %8 = vsyncpa [#allocation4], 0  ;;  %s376_s0 = inlined_call_operand.hbm [shape: f32[32,64], index: 0, kind: input, shape index: {}]   ;;  %s377_s1 = inlined_call_operand.hbm [shape: f32[64,192], index: 1, kind: input, shape index: {}]   ;;  %s378_s2 = inlined_call_operand.vmem [shape: f32[1,192], index: 2, kind: input, shape index: {}]   ;;  %s379_s3 = inlined_call_operand.vmem [shape: f32[32,192], index: 3, kind: output, shape index: {}]  }
   0x1   :  { %s14_s14 = sshll.u32 %s376_s0, 4  ;;  %s15_s14 = int_to_ptr.hbm [resolvable:$true] %s14_s14 }
   0x2   :  { %9 = vsyncpa [#allocation6], 0  ;;  %s296_s15 = smov [#allocation3]   ;;  %s27_s19 = sshll.u32 %s377_s1, 4  ;;  %s28_s19 = int_to_ptr.hbm [resolvable:$true] %s27_s19 }
   0x3   :  { %s16_s16 = sshll.u32 %s296_s15, 4  ;;  %s297_s20 = smov 128   ;;  %s17_s16 = int_to_ptr.vmem [resolvable:$true] %s16_s16 }
   0x4   :  { %s298_s21 = smov 8   ;;  %s299_s22 = smov [#allocation5]  }
   0x5   :  { %22 = dma.hbm_to_vmem [thread:$0]  %s15_s14, 512, %s17_s16, [#allocation4], %s297_s20, %s297_s20, %s298_s21  }
   0x6   :  { %s29_s23 = sshll.u32 %s299_s22, 4  ;;  %s300_s24 = smov 256   ;;  %s30_s23 = int_to_ptr.vmem [resolvable:$true] %s29_s23 }
   0x7   :  { %s301_s25 = smov 16  }
   0x8   :  { %35 = dma.hbm_to_vmem [thread:$0]  %s28_s19, 2048, %s30_s23, [#allocation6], %s300_s24, %s300_s24, %s301_s25  }
   0x9   :  { %292 = dma.done.wait [#allocation4], 512  }
   0xa   :  { %293 = vsyncadd [#allocation4], 4294966784 }
   0xb   :  { %294 = dma.done.wait [#allocation6], 2048  }
   0xc   :  { %295 = vsyncadd [#allocation6], 4294965248  ;;  %vm51_vm0 = vcmask 523264   ;;  %v302_v0 = vmov 0.0   ;;  %v85_v1 = vld [vmem:[#allocation5 + $0x70] sm:$0xff]  ;;  %v86_v2 = vld [vmem:[#allocation5 + $0x78] sm:$0xff] }
   0xd   :  { %52 = vst.msk [vmem:[#allocation2 + $0x8] sm:$0xff] %vm51_vm0, %v302_v0  ;;  %v83_v3 = vld [vmem:[#allocation5 + $0x60] sm:$0xff]  ;;  %221 = vmatpush.msra.mxu2 %v85_v1  ;;  %229 = vmatpush.msra.mxu3 %v86_v2  ;;  %v84_v4 = vld [vmem:[#allocation5 + $0x68] sm:$0xff]  ;;  %v81_v5 = vld [vmem:[#allocation5 + $0x50] sm:$0xff] }
   0xe   :  { %54 = vst.msk [vmem:[#allocation2 + $0x18] sm:$0xff] %vm51_vm0, %v302_v0  ;;  %v82_v6 = vld [vmem:[#allocation5 + $0x58] sm:$0xff]  ;;  %108 = vmatpush.msra.mxu0 %v85_v1  ;;  %137 = vmatpush.msra.mxu1 %v86_v2  ;;  %v79_v7 = vld [vmem:[#allocation5 + $0x40] sm:$0xff]  ;;  %v80_v8 = vld [vmem:[#allocation5 + $0x48] sm:$0xff] }
   0xf   :  { %56 = vst.msk [vmem:[#allocation2 + $0x28] sm:$0xff] %vm51_vm0, %v302_v0  ;;  %222 = vmatpush.msra.mxu2 %v83_v3  ;;  %230 = vmatpush.msra.mxu3 %v84_v4  ;;  %v77_v9 = vld [vmem:[#allocation5 + $0x30] sm:$0xff]  ;;  %v78_v10 = vld [vmem:[#allocation5 + $0x38] sm:$0xff]  ;;  %v75_v11 = vld [vmem:[#allocation5 + $0x20] sm:$0xff] }
  0x10   :  { %58 = vst.msk [vmem:[#allocation2 + $0x38] sm:$0xff] %vm51_vm0, %v302_v0  ;;  %109 = vmatpush.msra.mxu0 %v83_v3  ;;  %138 = vmatpush.msra.mxu1 %v84_v4  ;;  %v76_v12 = vld [vmem:[#allocation5 + $0x28] sm:$0xff]  ;;  %v73_v13 = vld [vmem:[#allocation5 + $0x10] sm:$0xff]  ;;  %v74_v14 = vld [vmem:[#allocation5 + $0x18] sm:$0xff] }
  0x11   :  { %223 = vmatpush.msra.mxu2 %v81_v5  ;;  %231 = vmatpush.msra.mxu3 %v82_v6  ;;  %v71_v15 = vld [vmem:[#allocation5] sm:$0xff]  ;;  %v72_v16 = vld [vmem:[#allocation5 + $0x8] sm:$0xff]  ;;  %v69_v17 = vld [vmem:[#allocation3 + $0x10] sm:$0xff] }
  0x12   :  { %110 = vmatpush.msra.mxu0 %v81_v5  ;;  %139 = vmatpush.msra.mxu1 %v82_v6  ;;  %v67_v18 = vld [vmem:[#allocation3] sm:$0xff]  ;;  %v70_v19 = vld [vmem:[#allocation3 + $0x18] sm:$0xff]  ;;  %v68_v20 = vld [vmem:[#allocation3 + $0x8] sm:$0xff] }
  0x13   :  { %224 = vmatpush.msra.mxu2 %v79_v7  ;;  %232 = vmatpush.msra.mxu3 %v80_v8  ;;  %v185_v21 = vld [vmem:[%s378_s2] sm:$0x3] }
  0x14   :  { %111 = vmatpush.msra.mxu0 %v79_v7  ;;  %140 = vmatpush.msra.mxu1 %v80_v8  ;;  %v60_v22 = vld [vmem:[#allocation2 + $0x8] sm:$0xff]  ;;  %v187_v23 = vperm.slane %v185_v21, 0  ;;  %v188_v34 = vperm.slane %v185_v21, 1 }
  0x15   :  { %225 = vmatpush.msra.mxu2 %v77_v9  ;;  %233 = vmatpush.msra.mxu3 %v78_v10  ;;  %v62_v32 = vld [vmem:[#allocation2 + $0x18] sm:$0xff] }
  0x16   :  { %112 = vmatpush.msra.mxu0 %v77_v9  ;;  %141 = vmatpush.msra.mxu1 %v78_v10  ;;  %v64_v27 = vld [vmem:[#allocation2 + $0x28] sm:$0xff] }
  0x17   :  { %226 = vmatpush.msra.mxu2 %v75_v11  ;;  %234 = vmatpush.msra.mxu3 %v76_v12  ;;  %v66_v38 = vld [vmem:[#allocation2 + $0x38] sm:$0xff] }
  0x18   :  { %113 = vmatpush.msra.mxu0 %v75_v11  ;;  %142 = vmatpush.msra.mxu1 %v76_v12 }
  0x19   :  { %227 = vmatpush.msra.mxu2 %v73_v13  ;;  %235 = vmatpush.msra.mxu3 %v74_v14 }
  0x1a   :  { %114 = vmatpush.msra.mxu0 %v73_v13  ;;  %143 = vmatpush.msra.mxu1 %v74_v14 }
  0x1b   :  { %228 = vmatpush.msra.mxu2 %v71_v15  ;;  %236 = vmatpush.msra.mxu3 %v72_v16 }
  0x1c   :  { %215 = vmatmul.msk.f32.vlgmr.msra.gmra.mxu2 %vm51_vm0, %v69_v17  ;;  %219 = vmatmul.msk.f32.vlgmr.msra.gmra.mxu3 %vm51_vm0, %v69_v17 }
  0x1d   :  { %115 = vmatpush.msra.mxu0 %v71_v15  ;;  %144 = vmatpush.msra.mxu1 %v72_v16 }
  0x1e   :  { %213 = vmatmul.msk.f32.vlgmr.msra.gmra.mxu0 %vm51_vm0, %v67_v18  ;;  %217 = vmatmul.msk.f32.vlgmr.msra.gmra.mxu1 %vm51_vm0, %v67_v18 }
  0x24   :  { %216 = vmatmul.msk.f32.gmra.mxu2 %vm51_vm0, %v70_v19  ;;  %220 = vmatmul.msk.f32.gmra.mxu3 %vm51_vm0, %v70_v19 }
  0x26   :  { %214 = vmatmul.msk.f32.gmra.mxu0 %vm51_vm0, %v68_v20  ;;  %218 = vmatmul.msk.f32.gmra.mxu1 %vm51_vm0, %v68_v20 }
  0x9b   :  { %v117_v24 = vpop.f32.mrf.mxu0  ;;  %v146_v25 = vpop.f32.mrf.mxu1 }
  0x9c   :  { %v159_v26 = vadd.f32 %v146_v25, %v60_v22  ;;  %v191_v28 = vadd.f32 %v187_v23, %v117_v24 }
  0x9e   :  { %167 = vst.msk [vmem:[#allocation2 + $0x8] sm:$0xff] %vm51_vm0, %v159_v26 }
  0x9f   :  { %v123_v29 = vpop.f32.mrf.mxu2  ;;  %v152_v30 = vpop.f32.mrf.mxu3  ;;  %199 = vst [vmem:[%s379_s3] sm:$0xff] %v191_v28 }
  0xa0   :  { %v163_v31 = vadd.f32 %v152_v30, %v64_v27  ;;  %v195_v33 = vadd.f32 %v187_v23, %v123_v29 }
  0xa2   :  { %171 = vst.msk [vmem:[#allocation2 + $0x28] sm:$0xff] %vm51_vm0, %v163_v31 }
  0xa3   :  { %v120_v35 = vpop.f32.mrf.mxu0  ;;  %v149_v36 = vpop.f32.mrf.mxu1  ;;  %203 = vst [vmem:[%s379_s3 + $0x20] sm:$0xff] %v195_v33 }
  0xa4   :  { %v161_v37 = vadd.f32 %v149_v36, %v62_v32  ;;  %v193_v40 = vadd.f32 %v187_v23, %v120_v35 }
  0xa5   :  { %v178_v39 = vld [vmem:[#allocation2 + $0x8] sm:$0xff] }
  0xa6   :  { %v192_v41 = vadd.f32 %v188_v34, %v178_v39  ;;  %169 = vst.msk [vmem:[#allocation2 + $0x18] sm:$0xff] %vm51_vm0, %v161_v37 }
  0xa7   :  { %v126_v42 = vpop.f32.mrf.mxu2  ;;  %v155_v43 = vpop.f32.mrf.mxu3  ;;  %201 = vst [vmem:[%s379_s3 + $0x10] sm:$0xff] %v193_v40 }
  0xa8   :  { %v165_v44 = vadd.f32 %v155_v43, %v66_v38  ;;  %200 = vst.msk [vmem:[%s379_s3 + $0x8] sm:$0xff] %vm51_vm0, %v192_v41  ;;  %v197_v46 = vadd.f32 %v187_v23, %v126_v42 }
  0xa9   :  { %v182_v45 = vld [vmem:[#allocation2 + $0x28] sm:$0xff] }
  0xaa   :  { %v196_v47 = vadd.f32 %v188_v34, %v182_v45  ;;  %173 = vst.msk [vmem:[#allocation2 + $0x38] sm:$0xff] %vm51_vm0, %v165_v44 }
  0xab   :  { %205 = vst [vmem:[%s379_s3 + $0x30] sm:$0xff] %v197_v46 }
  0xac   :  { %204 = vst.msk [vmem:[%s379_s3 + $0x28] sm:$0xff] %vm51_vm0, %v196_v47 }
  0xad   :  { %v180_v48 = vld [vmem:[#allocation2 + $0x18] sm:$0xff] }
  0xae   :  { %v194_v49 = vadd.f32 %v188_v34, %v180_v48 }
  0xb0   :  { %202 = vst.msk [vmem:[%s379_s3 + $0x18] sm:$0xff] %vm51_vm0, %v194_v49 }
  0xb1   :  { %v184_v50 = vld [vmem:[#allocation2 + $0x38] sm:$0xff] }
  0xb2   :  { %v198_v51 = vadd.f32 %v188_v34, %v184_v50 }
  0xb4   :  { %206 = vst.msk [vmem:[%s379_s3 + $0x38] sm:$0xff] %vm51_vm0, %v198_v51 }
  0xb5   :  { %211 = vsyncpa [#allocation4], 1 }
  0xb6   :  { %212 = vsyncpa [#allocation6], 1 }

// kernel: attention_forward.5
= control target key start
LH: loop header
LB: loop body
LE: loop exit
PB: predicated region body
PF: predicated region fallthrough
CT: control target
= control target key end

     0   :  { %8 = vsyncpa [#allocation4], 0  ;;  %s298_s0 = inlined_call_operand.vmem [shape: f32[32,64], index: 0, kind: input, shape index: {}]   ;;  %s299_s1 = inlined_call_operand.hbm [shape: f32[64,64], index: 1, kind: input, shape index: {}]   ;;  %s300_s2 = inlined_call_operand.vmem [shape: f32[1,64], index: 2, kind: input, shape index: {}]   ;;  %s301_s3 = inlined_call_operand.hbm [shape: f32[32,64], index: 3, kind: output, shape index: {}]  }
   0x1   :  { %9 = vsyncpa [#allocation5], 0  ;;  %s16_s14 = sshll.u32 %s299_s1, 4  ;;  %s230_s15 = smov [#allocation3]   ;;  %s17_s14 = int_to_ptr.hbm [resolvable:$true] %s16_s14 }
   0x2   :  { %s18_s16 = sshll.u32 %s230_s15, 4  ;;  %s231_s17 = smov 128   ;;  %s19_s16 = int_to_ptr.vmem [resolvable:$true] %s18_s16 }
   0x3   :  { %s232_s18 = smov 8  }
   0x4   :  { %24 = dma.hbm_to_vmem [thread:$0]  %s17_s14, 1024, %s19_s16, [#allocation4], %s231_s17, %s231_s17, %s232_s18  }
   0x5   :  { %226 = dma.done.wait [#allocation4], 1024  }
   0x6   :  { %227 = vsyncadd [#allocation4], 4294966272  ;;  %vm35_vm0 = vcmask 523264   ;;  %v233_v0 = vmov 0.0   ;;  %v55_v1 = vld [vmem:[#allocation3 + $0x38] sm:$0xff]  ;;  %v54_v2 = vld [vmem:[#allocation3 + $0x30] sm:$0xff] }
   0x7   :  { %36 = vst.msk [vmem:[#allocation2] sm:$0xff] %vm35_vm0, %v233_v0  ;;  %149 = vmatpush.msra.mxu2 %v55_v1  ;;  %150 = vmatpush.msra.mxu3 %v55_v1  ;;  %v53_v3 = vld [vmem:[#allocation3 + $0x28] sm:$0xff]  ;;  %v52_v4 = vld [vmem:[#allocation3 + $0x20] sm:$0xff]  ;;  %v51_v5 = vld [vmem:[#allocation3 + $0x18] sm:$0xff]  ;;  %s234_s27 = smov [#allocation6]   ;;  %s131_s4 = sshll.u32 %s301_s3, 4  ;;  %s132_s4 = int_to_ptr.hbm [resolvable:$true] %s131_s4 }
   0x8   :  { %37 = vst.msk [vmem:[#allocation2 + $0x8] sm:$0xff] %vm35_vm0, %v233_v0  ;;  %77 = vmatpush.msra.mxu0 %v55_v1  ;;  %148 = vmatpush.msra.mxu1 %v55_v1  ;;  %v50_v6 = vld [vmem:[#allocation3 + $0x10] sm:$0xff]  ;;  %v49_v7 = vld [vmem:[#allocation3 + $0x8] sm:$0xff]  ;;  %v48_v8 = vld [vmem:[#allocation3] sm:$0xff]  ;;  %s129_s28 = sshll.u32 %s234_s27, 4  ;;  %s130_s28 = int_to_ptr.vmem [resolvable:$true] %s129_s28 }
   0x9   :  { %38 = vst.msk [vmem:[#allocation2 + $0x10] sm:$0xff] %vm35_vm0, %v233_v0  ;;  %152 = vmatpush.msra.mxu2 %v54_v2  ;;  %153 = vmatpush.msra.mxu3 %v54_v2  ;;  %v46_v9 = vld [vmem:[%s298_s0 + $0x10] sm:$0xff]  ;;  %v47_v10 = vld [vmem:[%s298_s0 + $0x18] sm:$0xff]  ;;  %v44_v11 = vld [vmem:[%s298_s0] sm:$0xff] }
   0xa   :  { %39 = vst.msk [vmem:[#allocation2 + $0x18] sm:$0xff] %vm35_vm0, %v233_v0  ;;  %78 = vmatpush.msra.mxu0 %v54_v2  ;;  %151 = vmatpush.msra.mxu1 %v54_v2  ;;  %v45_v12 = vld [vmem:[%s298_s0 + $0x8] sm:$0xff]  ;;  %v177_v25 = vld [vmem:[%s300_s2] ss:$0 sm:$0xff] }
   0xb   :  { %155 = vmatpush.msra.mxu2 %v53_v3  ;;  %156 = vmatpush.msra.mxu3 %v53_v3 }
   0xc   :  { %79 = vmatpush.msra.mxu0 %v53_v3  ;;  %154 = vmatpush.msra.mxu1 %v53_v3 }
   0xd   :  { %158 = vmatpush.msra.mxu2 %v52_v4  ;;  %159 = vmatpush.msra.mxu3 %v52_v4 }
   0xe   :  { %80 = vmatpush.msra.mxu0 %v52_v4  ;;  %157 = vmatpush.msra.mxu1 %v52_v4  ;;  %v40_v13 = vld [vmem:[#allocation2] sm:$0xff] }
   0xf   :  { %161 = vmatpush.msra.mxu2 %v51_v5  ;;  %162 = vmatpush.msra.mxu3 %v51_v5  ;;  %v41_v14 = vld [vmem:[#allocation2 + $0x8] sm:$0xff] }
  0x10   :  { %81 = vmatpush.msra.mxu0 %v51_v5  ;;  %160 = vmatpush.msra.mxu1 %v51_v5  ;;  %v42_v19 = vld [vmem:[#allocation2 + $0x10] sm:$0xff] }
  0x11   :  { %164 = vmatpush.msra.mxu2 %v50_v6  ;;  %165 = vmatpush.msra.mxu3 %v50_v6  ;;  %v43_v20 = vld [vmem:[#allocation2 + $0x18] sm:$0xff] }
  0x12   :  { %82 = vmatpush.msra.mxu0 %v50_v6  ;;  %163 = vmatpush.msra.mxu1 %v50_v6 }
  0x13   :  { %167 = vmatpush.msra.mxu2 %v49_v7  ;;  %168 = vmatpush.msra.mxu3 %v49_v7 }
  0x14   :  { %83 = vmatpush.msra.mxu0 %v49_v7  ;;  %166 = vmatpush.msra.mxu1 %v49_v7 }
  0x15   :  { %170 = vmatpush.msra.mxu2 %v48_v8  ;;  %171 = vmatpush.msra.mxu3 %v48_v8 }
  0x16   :  { %146 = vmatmul.msk.f32.vlgmr.msra.gmra.mxu2 %vm35_vm0, %v46_v9  ;;  %147 = vmatmul.msk.f32.vlgmr.msra.gmra.mxu3 %vm35_vm0, %v47_v10 }
  0x17   :  { %84 = vmatpush.msra.mxu0 %v48_v8  ;;  %169 = vmatpush.msra.mxu1 %v48_v8 }
  0x18   :  { %144 = vmatmul.msk.f32.vlgmr.msra.gmra.mxu0 %vm35_vm0, %v44_v11  ;;  %145 = vmatmul.msk.f32.vlgmr.msra.gmra.mxu1 %vm35_vm0, %v45_v12 }
  0x95   :  { %v86_v15 = vpop.f32.mrf.mxu0  ;;  %v89_v16 = vpop.f32.mrf.mxu1 }
  0x96   :  { %v98_v17 = vadd.f32 %v86_v15, %v40_v13  ;;  %v99_v18 = vadd.f32 %v89_v16, %v41_v14 }
  0x98   :  { %102 = vst.msk [vmem:[#allocation2] sm:$0xff] %vm35_vm0, %v98_v17 }
  0x99   :  { %103 = vst.msk [vmem:[#allocation2 + $0x8] sm:$0xff] %vm35_vm0, %v99_v18  ;;  %v92_v21 = vpop.f32.mrf.mxu2  ;;  %v95_v22 = vpop.f32.mrf.mxu3 }
  0x9a   :  { %v100_v23 = vadd.f32 %v92_v21, %v42_v19  ;;  %v101_v24 = vadd.f32 %v95_v22, %v43_v20 }
  0x9c   :  { %104 = vst.msk [vmem:[#allocation2 + $0x10] sm:$0xff] %vm35_vm0, %v100_v23 }
  0x9d   :  { %105 = vst.msk [vmem:[#allocation2 + $0x18] sm:$0xff] %vm35_vm0, %v101_v24 }
  0x9f   :  { %v109_v26 = vld [vmem:[#allocation2] sm:$0xff] }
  0xa0   :  { %v110_v27 = vld [vmem:[#allocation2 + $0x8] sm:$0xff]  ;;  %v117_v28 = vadd.f32 %v177_v25, %v109_v26 }
  0xa1   :  { %v118_v29 = vadd.f32 %v177_v25, %v110_v27 }
  0xa2   :  { %121 = vst.msk [vmem:[#allocation6] sm:$0xff] %vm35_vm0, %v117_v28 }
  0xa3   :  { %v111_v30 = vld [vmem:[#allocation2 + $0x10] sm:$0xff]  ;;  %122 = vst.msk [vmem:[#allocation6 + $0x8] sm:$0xff] %vm35_vm0, %v118_v29 }
  0xa4   :  { %v112_v31 = vld [vmem:[#allocation2 + $0x18] sm:$0xff]  ;;  %v119_v32 = vadd.f32 %v177_v25, %v111_v30 }
  0xa5   :  { %v120_v33 = vadd.f32 %v177_v25, %v112_v31 }
  0xa6   :  { %123 = vst.msk [vmem:[#allocation6 + $0x10] sm:$0xff] %vm35_vm0, %v119_v32 }
  0xa7   :  { %124 = vst.msk [vmem:[#allocation6 + $0x18] sm:$0xff] %vm35_vm0, %v120_v33 }
  0xa8   :  { %137 = dma.vmem_to_hbm [thread:$0]  %s130_s28, 512, %s132_s4, [#allocation5], %s231_s17, %s231_s17, %s232_s18  }
  0xa9   :  { %228 = dma.done.wait [#allocation5], 512  }
  0xaa   :  { %229 = vsyncadd [#allocation5], 4294966784 }
  0xab   :  { %142 = vsyncpa [#allocation4], 1 }
  0xac   :  { %143 = vsyncpa [#allocation5], 1 }

// kernel: attention_forward.4
= control target key start
LH: loop header
LB: loop body
LE: loop exit
PB: predicated region body
PF: predicated region fallthrough
CT: control target
= control target key end

     0   :  { %8 = vsyncpa [#allocation3], 0  ;;  %s1913_s0 = inlined_call_operand.vmem [shape: f32[2,16,192], index: 0, kind: input, shape index: {}]   ;;  %s1914_s1 = inlined_call_operand.vmem [shape: f32[2,16,64], index: 1, kind: output, shape index: {0}]   ;;  %s1915_s2 = inlined_call_operand.hbm [shape: f32[2,8,16,16], index: 2, kind: output, shape index: {1}]  }
   0x1   :  { %10 = vsyncpa [#allocation3 + $0x1], 0  ;;  %s1468_s9 = smov 0   ;;  %s1470_s10 = smov 0  }
   0x2   :  { %s1472_s11 = smov 0   ;;  %s1474_s12 = smov 0  }
   0x3 LB: > { %s1489_s13 = sadd.s32 4294967295, %s1435_s12   ;;  %s1140_s14 = sadd.s32 4294967294, %s1435_s12   ;;  %s1435_s12 = sphi %s1474_s12, %s1926_s12   ;;  %s1431_s11 = sphi %s1472_s11, %s1925_s11   ;;  %s1427_s10 = sphi %s1470_s10, %s1924_s10   ;;  %s1423_s9 = sphi %s1468_s9, %s1923_s9  }
   0x4   : > { %s1493_s15 = sadd.s32 1, %s1435_s12   ;;  %s75_s16 = sadd.s32 1, %s1431_s11 }
   0x5   : > { %s72_s17 = ssub.s32 %s1435_s12, %s1493_s15  ;;  %p85_p0 = scmp.ne.s32.totalorder %s1431_s11, %s1427_s10 }
   0x6   : > { %p73_p1 = scmp.eq.s32.totalorder %s72_s17, 0  ;;  %p86_p2 = scmp.eq.s32.totalorder %s1489_s13, 1 }
   0x7   : > { %p91_p3 = scmp.ne.s32.totalorder %s1427_s10, %s1423_s9  ;;  %p92_p4 = scmp.eq.s32.totalorder %s1140_s14, 1 }
   0x8   : > { %s1504_s18 = scalar_select %p73_p1, %s1431_s11, %s75_s16  }
   0x9   : > { %p1506_p5 = por %p86_p2, %p85_p0  ;;  %p1510_p6 = por %p92_p4, %p91_p3 }
   0xa   : > { %p1143_p7 = scmp.ge.s32.totalorder %s1435_s12, 1  ;;  %p118_p8 = scmp.lt.s32.totalorder %s1435_s12, 3 }
   0xc   : > { %p119_p9 = pnand %p1143_p7, %p118_p8 }
   0xd   : > { %p145_p10 = scmp.lt.s32.totalorder (!%p119_p9), %s1489_s13, 1  ;;  %s1437_s26 = smov (!%p119_p9), 64  }
   0xe   : > { %122 = sbr.rel (%p119_p9) target bundleno = 1348 (0x544), region = 24  ;;  %s1917_s27 = smov (!%p119_p9), 56  }
   0xf   : > { %s1439_s28 = smov (!%p119_p9), 120   ;;  %s1440_s29 = smov (!%p119_p9), 40  }
  0x10   : > { %s1441_s30 = smov (!%p119_p9), 112   ;;  %s1442_s3 = smov (!%p119_p9), 24  }
  0x11   : > { %s1443_s4 = smov (!%p119_p9), 32   ;;  %s1444_s5 = smov (!%p119_p9), 96  }
  0x12   : > { %s1445_s6 = smov (!%p119_p9), 48   ;;  %s1446_s7 = smov (!%p119_p9), 104  }
  0x13   : > { %s1518_s21 = scalar_select %p145_p10, %s1489_s13, 1  ;;  %vm167_vm0 = vcmask 64512   ;;  %vm201_vm1 = vcmask 130048   ;;  %vm366_vm2 = vcmask 130112   ;;  %vm476_vm3 = vcmask 195712  }
  0x14   : > { %s1447_s8 = smov 88   ;;  %s1448_s14 = smov 16   ;;  %vm586_vm4 = vcmask 261312  }
  0x15   : > { %s1216_s22 = sshll.u32 %s1518_s21, 5  ;;  %s1449_s16 = smov 8  }
  0x16   : > { %s1524_s25 = scalar_lea.vmem %s1913_s0, %s1216_s22  ;;  %s1450_s17 = smov 80  }
  0x17   : > { %v1527_v0 = vld [vmem:[%s1524_s25 + $0x10] sm:$0xff]  ;;  %v1531_v1 = vld [vmem:[%s1524_s25] sm:$0xff]  ;;  %v1602_v29 = vld [vmem:[%s1524_s25 + $0x18] sm:$0xff]  ;;  %s1451_s22 = smov 72   ;;  %s1916_s23 = sand.u32 1, %s1427_s10  }
  0x18   : > { %165 = vrot.lane.b32.xlu0 %v1527_v0, %s1437_s26  ;;  %263 = vrot.lane.b32.xlu2 %v1527_v0, %s1917_s27  ;;  %v1539_v2 = vmul.f32 0.35355338, %v1531_v1  ;;  %v1544_v3 = vmul.f32 0.35355338, %v1527_v0  ;;  %v1605_v30 = vld [vmem:[%s1524_s25 + $0x8] sm:$0xff]  ;;  %s1144_s24 = sshll.u32 %s1916_s23, 7 }
  0x19   : > { %246 = vmatpush.msra.mxu1 %v1602_v29  ;;  %s1637_s25 = scalar_lea.vmem [#allocation2], %s1144_s24 }
  0x1a   : > { %257 = vrot.lane.b32.xlu1 %v1539_v2, %s1439_s28 }
  0x1b   : > { %247 = vmatpush.msra.mxu1 %v1605_v30 }
  0x20   : > { %163 = vrot.lane.b32.xlu0 %v1531_v1, %s1437_s26  ;;  %485 = vrot.lane.b32.xlu2 %v1527_v0, %s1440_s29  ;;  %s1217_s26 = sshll.u32 %s1518_s21, 4  ;;  %s1921_s21 = smov 56  }
  0x22   : > { %259 = vrot.lane.b32.xlu1 %v1544_v3, %s1439_s28 }
  0x28   : > { %261 = vrot.lane.b32.xlu0 %v1531_v1, %s1917_s27  ;;  %371 = vrot.lane.b32.xlu2 %v1544_v3, %s1441_s30  ;;  %s1668_s27 = scalar_lea.vmem %s1914_s1, %s1217_s26 }
  0x30   : > { %369 = vrot.lane.b32.xlu0 %v1539_v2, %s1441_s30  ;;  %595 = vrot.lane.b32.xlu2 %v1527_v0, %s1443_s4 }
  0x38   : > { %705 = vrot.lane.b32.xlu0 %v1527_v0, %s1442_s3 }
  0x40   : > { %589 = vrot.lane.b32.xlu0 %v1539_v2, %s1444_s5 }
  0x72   : > { %v264_v4 = vpop.permute.xlu2 %263 }
  0x73   : > { %1155 = vmatpush.xpose.msk.msra.mxu2 %vm167_vm0, %v264_v4 }
  0x7a   : > { %v486_v23 = vpop.permute.xlu2 %485 }
  0x82   : > { %v372_v38 = vpop.permute.xlu2 %371 }
  0x8a   : > { %v166_v5 = vpop.permute.xlu0 %165  ;;  %v596_v39 = vpop.permute.xlu2 %595 }
  0x8b   : > { %1149 = vmatpush.xpose.msk.msra.mxu0 %vm167_vm0, %v166_v5 }
  0x8c   : > { %v258_v8 = vpop.permute.xlu1 %257 }
  0x92   : > { %v164_v6 = vpop.permute.xlu0 %163 }
  0x93   : > { %1150 = vmatpush.xpose.msk.msra.mxu0 %vm167_vm0, %v164_v6 }
  0x94   : > { %v260_v9 = vpop.permute.xlu1 %259 }
  0x96   : > { %1151 = vmatmul.msk.f32.vlgmr.msra.gmra.mxu0 %vm167_vm0, %v1539_v2 }
  0x97   : > { %1171 = vmatpush.xpose.msk.msrb.mxu0 %vm167_vm0, %v486_v23  ;;  %v1695_v23 = vpack.i.bf16 %v1605_v30, %v1602_v29 }
  0x9a   : > { %v262_v7 = vpop.permute.xlu0 %261 }
  0x9b   : > { %1156 = vmatpush.xpose.msk.msra.mxu2 %vm167_vm0, %v262_v7 }
  0x9e   : > { %1152 = vmatmul.msk.f32.gmra.mxu0 %vm167_vm0, %v1544_v3  ;;  %1157 = vmatmul.msk.f32.vlgmr.msra.gmra.mxu2 %vm167_vm0, %v258_v8 }
  0xa2   : > { %v370_v31 = vpop.permute.xlu0 %369 }
  0xa6   : > { %1158 = vmatmul.msk.f32.gmra.mxu2 %vm167_vm0, %v260_v9 }
  0xaa   : > { %v706_v33 = vpop.permute.xlu0 %705 }
  0xb2   : > { %v590_v41 = vpop.permute.xlu0 %589 }
 0x113   : > { %v195_v10 = vpop.f32.mrf.mxu0 }
 0x114   : > { %v202_v11 = vsel %vm201_vm1, %v195_v10, -inf }
 0x115   : > { %203 = vmax.xlane.f32.xlu1 %v202_v11 }
 0x11b   : > { %v198_v12 = vpop.f32.mrf.mxu0 }
 0x11c   : > { %v205_v13 = vsel %vm201_vm1, %v198_v12, -inf }
 0x11d   : > { %206 = vmax.xlane.f32.xlu1 %v205_v13 }
 0x121   : > { %v1593_v22 = vpop.f32.mrf.mxu2 }
 0x122   : > { %v296_v37 = vsel %vm201_vm1, %v1593_v22, -inf }
 0x129   : > { %v1597_v26 = vpop.f32.mrf.mxu2 }
 0x12a   : > { %v299_v27 = vsel %vm201_vm1, %v1597_v26, -inf }
 0x136   : > { %375 = vrot.lane.b32.xlu1 %v1527_v0, %s1445_s6 }
 0x13e   : > { %373 = vrot.lane.b32.xlu1 %v1531_v1, %s1445_s6 }
 0x146   : > { %483 = vrot.lane.b32.xlu1 %v1531_v1, %s1440_s29 }
 0x14e   : > { %479 = vrot.lane.b32.xlu1 %v1539_v2, %s1446_s7 }
 0x156   : > { %481 = vrot.lane.b32.xlu1 %v1544_v3, %s1446_s7 }
 0x15e   : > { %593 = vrot.lane.b32.xlu1 %v1531_v1, %s1443_s4 }
 0x166   : > { %699 = vrot.lane.b32.xlu1 %v1539_v2, %s1447_s8 }
 0x16e   : > { %815 = vrot.lane.b32.xlu1 %v1527_v0, %s1448_s14 }
 0x176   : > { %923 = vrot.lane.b32.xlu1 %v1531_v1, %s1449_s16 }
 0x17e   : > { %811 = vrot.lane.b32.xlu1 %v1544_v3, %s1450_s17 }
 0x188   : > { %v204_v14 = vpop.xlane.xlu1 %203 }
 0x189   : > { %v208_v15 = vsub.f32 %v195_v10, %v204_v14 }
 0x18b   : > { %v210_v16 = vmul.f32 1.442695, %v208_v15 }
 0x18d   : > { %1309 = vpow2.f32 %v210_v16 }
 0x190   : > { %v207_v17 = vpop.xlane.xlu1 %206 }
 0x191   : > { %v209_v18 = vsub.f32 %v198_v12, %v207_v17 }
 0x193   : > { %v1310_v19 = vpop.eup %1309  ;;  %v212_v20 = vmul.f32 1.442695, %v209_v18 }
 0x194   : > { %v214_v21 = vsel %vm201_vm1, %v1310_v19, 0.0 }
 0x195   : > { %1311 = vpow2.f32 %v212_v20  ;;  %215 = vadd.xlane.f32.xlu2 %v214_v21 }
 0x19b   : > { %v1312_v24 = vpop.eup %1311 }
 0x19c   : > { %v217_v25 = vsel %vm201_vm1, %v1312_v24, 0.0 }
 0x19d   : > { %218 = vadd.xlane.f32.xlu0 %v217_v25 }
 0x1a8   : > { %300 = vmax.xlane.f32.xlu1 %v299_v27  ;;  %v376_v28 = vpop.permute.xlu1 %375 }
 0x1a9   : > { %1163 = vmatpush.xpose.msk.msrb.mxu1 %vm167_vm0, %v376_v28 }
 0x1ad   : > { %703 = vrot.lane.b32.xlu2 %v1531_v1, %s1442_s3 }
 0x1b0   : > { %v374_v32 = vpop.permute.xlu1 %373 }
 0x1b1   : > { %701 = vrot.lane.b32.xlu0 %v1544_v3, %s1447_s8  ;;  %1164 = vmatpush.xpose.msk.msrb.mxu1 %vm167_vm0, %v374_v32 }
 0x1b5   : > { %591 = vrot.lane.b32.xlu2 %v1544_v3, %s1444_s5 }
 0x1b8   : > { %v484_v34 = vpop.permute.xlu1 %483 }
 0x1b9   : > { %813 = vrot.lane.b32.xlu0 %v1531_v1, %s1448_s14  ;;  %1172 = vmatpush.xpose.msk.msrb.mxu0 %vm167_vm0, %v484_v34 }
 0x1bd   : > { %1187 = vmatpush.xpose.msk.msra.mxu0 %vm167_vm0, %v706_v33  ;;  %925 = vrot.lane.b32.xlu2 %v1527_v0, %s1449_s16 }
 0x1c0   : > { %v480_v35 = vpop.permute.xlu1 %479 }
 0x1c1   : > { %919 = vrot.lane.b32.xlu0 %v1539_v2, %s1451_s22  ;;  %1173 = vmatmul.msk.f32.vlgmr.msrb.gmra.mxu0 %vm167_vm0, %v480_v35 }
 0x1c5   : > { %809 = vrot.lane.b32.xlu2 %v1539_v2, %s1450_s17 }
 0x1c8   : > { %v482_v36 = vpop.permute.xlu1 %481 }
 0x1c9   : > { %1174 = vmatmul.msk.f32.gmra.mxu0 %vm167_vm0, %v482_v36 }
 0x1cd   : > { %921 = vrot.lane.b32.xlu2 %v1544_v3, %s1451_s22 }
 0x1d0   : > { %v594_v40 = vpop.permute.xlu1 %593 }
 0x1d8   : > { %v700_v44 = vpop.permute.xlu1 %699 }
 0x1e0   : > { %v816_v51 = vpop.permute.xlu1 %815 }
 0x1e8   : > { %v924_v54 = vpop.permute.xlu1 %923 }
 0x1eb   : > { %297 = vmax.xlane.f32.xlu0 %v296_v37 }
 0x1f0   : > { %v812_v63 = vpop.permute.xlu1 %811 }
 0x208   : > { %v216_v42 = vpop.xlane.xlu2 %215 }
 0x209   : > { %1313 = vrcp.f32 %v216_v42 }
 0x20f   : > { %v1314_v43 = vpop.eup %1313 }
 0x210   : > { %v704_v45 = vpop.permute.xlu2 %703  ;;  %v219_v46 = vpop.xlane.xlu0 %218  ;;  %v222_v47 = vmul.f32 %v1314_v43, %v1310_v19 }
 0x211   : > { %1315 = vrcp.f32 %v219_v46  ;;  %1188 = vmatpush.xpose.msk.msra.mxu0 %vm167_vm0, %v704_v45 }
 0x212   : > { %224 = vst.msk [vmem:[%s1637_s25] sm:$0xff] %vm201_vm1, %v222_v47  ;;  %1153 = vmatmul.msk.f32.vlgmr.msra.gmra.mxu1 %vm201_vm1, %v222_v47 }
 0x213   : > { %1179 = vmatpush.xpose.msk.msra.mxu1 %vm167_vm0, %v596_v39 }
 0x214   : > { %1189 = vmatmul.msk.f32.vlgmr.msra.gmra.mxu0 %vm167_vm0, %v700_v44 }
 0x217   : > { %v1316_v48 = vpop.eup %1315  ;;  %1180 = vmatpush.xpose.msk.msra.mxu1 %vm167_vm0, %v594_v40 }
 0x218   : > { %v223_v49 = vmul.f32 %v1316_v48, %v1312_v24  ;;  %v592_v50 = vpop.permute.xlu2 %591 }
 0x21a   : > { %225 = vst.msk [vmem:[%s1637_s25 + $0x8] sm:$0xff] %vm201_vm1, %v223_v49  ;;  %1154 = vmatmul.msk.f32.gmra.mxu1 %vm201_vm1, %v223_v49 }
 0x21b   : > { %v301_v0 = vpop.xlane.xlu1 %300 }
 0x21c   : > { %v303_v1 = vsub.f32 %v1597_v26, %v301_v0 }
 0x21e   : > { %v306_v2 = vmul.f32 1.442695, %v303_v1 }
 0x220   : > { %v926_v52 = vpop.permute.xlu2 %925  ;;  %1317 = vpow2.f32 %v306_v2 }
 0x221   : > { %1203 = vmatpush.xpose.msk.msrb.mxu0 %vm167_vm0, %v926_v52 }
 0x222   : > { %1165 = vmatmul.msk.f32.vlgmr.msrb.gmra.mxu1 %vm167_vm0, %v370_v31 }
 0x223   : > { %v702_v53 = vpop.permute.xlu0 %701  ;;  %1195 = vmatpush.xpose.msk.msrb.mxu1 %vm167_vm0, %v816_v51 }
 0x224   : > { %1190 = vmatmul.msk.f32.gmra.mxu0 %vm167_vm0, %v702_v53 }
 0x225   : > { %1204 = vmatpush.xpose.msk.msrb.mxu0 %vm167_vm0, %v924_v54 }
 0x226   : > { %v1673_v7 = vpop.eup %1317 }
 0x227   : > { %v311_v10 = vsel %vm201_vm1, %v1673_v7, 0.0 }
 0x228   : > { %v810_v56 = vpop.permute.xlu2 %809 }
 0x22a   : > { %1166 = vmatmul.msk.f32.gmra.mxu1 %vm167_vm0, %v372_v38 }
 0x22b   : > { %v814_v55 = vpop.permute.xlu0 %813 }
 0x22c   : > { %1196 = vmatpush.xpose.msk.msrb.mxu1 %vm167_vm0, %v814_v55 }
 0x230   : > { %v922_v58 = vpop.permute.xlu2 %921 }
 0x232   : > { %1181 = vmatmul.msk.f32.vlgmr.msra.gmra.mxu1 %vm167_vm0, %v590_v41 }
 0x233   : > { %v920_v57 = vpop.permute.xlu0 %919 }
 0x234   : > { %1205 = vmatmul.msk.f32.vlgmr.msrb.gmra.mxu0 %vm167_vm0, %v920_v57 }
 0x23a   : > { %1182 = vmatmul.msk.f32.gmra.mxu1 %vm167_vm0, %v592_v50 }
 0x23c   : > { %1206 = vmatmul.msk.f32.gmra.mxu0 %vm167_vm0, %v922_v58 }
 0x23e   : > { %v512_v59 = vpop.f32.mrf.mxu0 }
 0x23f   : > { %v518_v60 = vsel %vm201_vm1, %v512_v59, -inf }
 0x240   : > { %519 = vmax.xlane.f32.xlu0 %v518_v60 }
 0x242   : > { %1197 = vmatmul.msk.f32.vlgmr.msrb.gmra.mxu1 %vm167_vm0, %v810_v56 }
 0x246   : > { %v515_v61 = vpop.f32.mrf.mxu0 }
 0x247   : > { %v521_v62 = vsel %vm201_vm1, %v515_v61, -inf }
 0x248   : > { %522 = vmax.xlane.f32.xlu1 %v521_v62 }
 0x24a   : > { %1198 = vmatmul.msk.f32.gmra.mxu1 %vm167_vm0, %v812_v63 }
 0x25e   : > { %v298_v6 = vpop.xlane.xlu0 %297 }
 0x25f   : > { %v302_v9 = vsub.f32 %v1593_v22, %v298_v6 }
 0x261   : > { %v304_v11 = vmul.f32 1.442695, %v302_v9 }
 0x263   : > { %1319 = vpow2.f32 %v304_v11 }
 0x269   : > { %v1681_v14 = vpop.eup %1319 }
 0x26a   : > { %v308_v15 = vsel %vm201_vm1, %v1681_v14, 0.0 }
 0x28f   : > { %v249_v3 = vpop.f32.mrf.mxu1 }
 0x290   : > { %255 = vst.msk [vmem:[%s1668_s27] sm:$0xff] %vm167_vm0, %v249_v3 }
 0x291   : > { %v732_v4 = vpop.f32.mrf.mxu0 }
 0x292   : > { %v738_v5 = vsel %vm201_vm1, %v732_v4, -inf }
 0x293   : > { %739 = vmax.xlane.f32.xlu2 %v738_v5 }
 0x297   : > { %v252_v8 = vpop.f32.mrf.mxu1 }
 0x298   : > { %256 = vst.msk [vmem:[%s1668_s27 + $0x8] sm:$0xff] %vm167_vm0, %v252_v8 }
 0x29b   : > { %312 = vadd.xlane.f32.xlu2 %v311_v10 }
 0x29f   : > { %v1703_v26 = vpop.f32.mrf.mxu1 }
 0x2a0   : > { %v408_v31 = vsel %vm201_vm1, %v1703_v26, -inf }
 0x2a1   : > { %v735_v12 = vpop.f32.mrf.mxu0 }
 0x2a2   : > { %v741_v13 = vsel %vm201_vm1, %v735_v12, -inf }
 0x2a3   : > { %742 = vmax.xlane.f32.xlu0 %v741_v13 }
 0x2a7   : > { %v1707_v29 = vpop.f32.mrf.mxu1 }
 0x2a8   : > { %v411_v30 = vsel %vm201_vm1, %v1707_v29, -inf }
 0x2ab   : > { %309 = vadd.xlane.f32.xlu0 %v308_v15 }
 0x2af   : > { %v1719_v35 = vpop.f32.mrf.mxu1 }
 0x2b0   : > { %v628_v36 = vsel %vm201_vm1, %v1719_v35, -inf }
 0x2b1   : > { %v1685_v16 = vpop.f32.mrf.mxu0 }
 0x2b2   : > { %v958_v17 = vsel %vm201_vm1, %v1685_v16, -inf }
 0x2b3   : > { %v520_v18 = vpop.xlane.xlu0 %519  ;;  %959 = vmax.xlane.f32.xlu1 %v958_v17 }
 0x2b4   : > { %v524_v19 = vsub.f32 %v512_v59, %v520_v18 }
 0x2b6   : > { %v526_v20 = vmul.f32 1.442695, %v524_v19 }
 0x2b7   : > { %v1725_v37 = vpop.f32.mrf.mxu1 }
 0x2b8   : > { %1321 = vpow2.f32 %v526_v20  ;;  %v631_v38 = vsel %vm201_vm1, %v1725_v37, -inf }
 0x2b9   : > { %v1689_v21 = vpop.f32.mrf.mxu0 }
 0x2ba   : > { %v961_v22 = vsel %vm201_vm1, %v1689_v21, -inf }
 0x2bb   : > { %962 = vmax.xlane.f32.xlu1 %v961_v22  ;;  %v523_v27 = vpop.xlane.xlu1 %522 }
 0x2bc   : > { %v525_v28 = vsub.f32 %v515_v61, %v523_v27 }
 0x2be   : > { %v1697_v24 = vpop.eup %1321  ;;  %v528_v32 = vmul.f32 1.442695, %v525_v28 }
 0x2bf   : > { %1275 = vrot.lane.b32.xlu0 %v1695_v23, %s1439_s28  ;;  %v530_v25 = vsel %vm201_vm1, %v1697_v24, 0.0  ;;  %v1733_v46 = vpop.f32.mrf.mxu1  ;;  %s1218_s28 = sshll.u32 %s1489_s13, 7 }
 0x2c0   : > { %531 = vadd.xlane.f32.xlu2 %v530_v25  ;;  %1323 = vpow2.f32 %v528_v32  ;;  %v848_v50 = vsel %vm201_vm1, %v1733_v46, -inf }
 0x2c6   : > { %v1711_v33 = vpop.eup %1323 }
 0x2c7   : > { %v533_v34 = vsel %vm201_vm1, %v1711_v33, 0.0  ;;  %v1740_v52 = vpop.f32.mrf.mxu1 }
 0x2c8   : > { %409 = vmax.xlane.f32.xlu2 %v408_v31  ;;  %v851_v54 = vsel %vm201_vm1, %v1740_v52, -inf }
 0x2d0   : > { %412 = vmax.xlane.f32.xlu2 %v411_v30 }
 0x2d4   : > { %1280 = vrot.lane.b32.xlu1 %v1695_v23, %s1441_s30 }
 0x2d8   : > { %534 = vadd.xlane.f32.xlu2 %v533_v34 }
 0x2dc   : > { %1290 = vrot.lane.b32.xlu1 %v1695_v23, %s1444_s5 }
 0x2e9   : > { %629 = vmax.xlane.f32.xlu0 %v628_v36 }
 0x2fd   : > { %1285 = vrot.lane.b32.xlu0 %v1695_v23, %s1446_s7 }
 0x306   : > { %v740_v39 = vpop.xlane.xlu2 %739  ;;  %632 = vmax.xlane.f32.xlu1 %v631_v38 }
 0x307   : > { %v744_v40 = vsub.f32 %v732_v4, %v740_v39 }
 0x309   : > { %v746_v41 = vmul.f32 1.442695, %v744_v40 }
 0x30b   : > { %1325 = vpow2.f32 %v746_v41 }
 0x30e   : > { %v313_v42 = vpop.xlane.xlu2 %312 }
 0x30f   : > { %1327 = vrcp.f32 %v313_v42 }
 0x311   : > { %v1729_v43 = vpop.eup %1325 }
 0x312   : > { %v750_v44 = vsel %vm201_vm1, %v1729_v43, 0.0 }
 0x313   : > { %751 = vadd.xlane.f32.xlu2 %v750_v44 }
 0x315   : > { %v1328_v45 = vpop.eup %1327 }
 0x316   : > { %v743_v47 = vpop.xlane.xlu0 %742  ;;  %v317_v48 = vmul.f32 %v1328_v45, %v1673_v7 }
 0x317   : > { %v745_v49 = vsub.f32 %v735_v12, %v743_v47 }
 0x318   : > { %1160 = vst.msk [vmem:[%s1637_s25 + $0x18] sm:$0xff] %vm201_vm1, %v317_v48 }
 0x319   : > { %v748_v51 = vmul.f32 1.442695, %v745_v49 }
 0x31b   : > { %849 = vmax.xlane.f32.xlu2 %v848_v50 }
 0x31e   : > { %v310_v53 = vpop.xlane.xlu0 %309 }
 0x31f   : > { %1329 = vrcp.f32 %v310_v53 }
 0x320   : > { %1331 = vpow2.f32 %v748_v51 }
 0x323   : > { %852 = vmax.xlane.f32.xlu2 %v851_v54 }
 0x325   : > { %v1330_v55 = vpop.eup %1329 }
 0x326   : > { %v316_v56 = vmul.f32 %v1330_v55, %v1681_v14  ;;  %v1745_v57 = vpop.eup %1331  ;;  %v960_v63 = vpop.xlane.xlu1 %959 }
 0x327   : > { %v753_v58 = vsel %vm201_vm1, %v1745_v57, 0.0 }
 0x328   : > { %1159 = vst.msk [vmem:[%s1637_s25 + $0x10] sm:$0xff] %vm201_vm1, %v316_v56 }
 0x32b   : > { %754 = vadd.xlane.f32.xlu2 %v753_v58 }
 0x32e   : > { %v1756_v4 = vpop.xlane.xlu1 %962 }
 0x331   : > { %v1276_v59 = vpop.permute.xlu0 %1275 }
 0x332   : > { %v1277_v60 = vunpack.i.l.bf16 %v1276_v59  ;;  %v1278_v61 = vunpack.i.h.bf16 %v1276_v59 }
 0x333   : > { %v532_v62 = vpop.xlane.xlu2 %531 }
 0x334   : > { %1333 = vrcp.f32 %v532_v62  ;;  %349 = vmatpush.msra.mxu3 %v1277_v60  ;;  %v965_v60 = vsub.f32 %v1689_v21, %v1756_v4 }
 0x336   : > { %350 = vmatpush.msra.mxu3 %v1278_v61  ;;  %v968_v61 = vmul.f32 1.442695, %v965_v60 }
 0x337   : > { %1161 = vmatmul.msk.f32.vlgmr.msra.gmra.mxu3 %vm201_vm1, %v316_v56 }
 0x33a   : > { %v1334_v0 = vpop.eup %1333 }
 0x33b   : > { %v410_v1 = vpop.xlane.xlu2 %409  ;;  %v538_v2 = vmul.f32 %v1334_v0, %v1697_v24 }
 0x33c   : > { %v414_v3 = vsub.f32 %v1703_v26, %v410_v1 }
 0x33d   : > { %1175 = vst.msk [vmem:[%s1637_s25 + $0x30] sm:$0xff] %vm201_vm1, %v538_v2 }
 0x33e   : > { %v416_v5 = vmul.f32 1.442695, %v414_v3 }
 0x33f   : > { %1162 = vmatmul.msk.f32.gmra.mxu3 %vm201_vm1, %v317_v48 }
 0x340   : > { %1335 = vpow2.f32 %v416_v5 }
 0x343   : > { %v413_v6 = vpop.xlane.xlu2 %412 }
 0x344   : > { %v415_v7 = vsub.f32 %v1707_v29, %v413_v6 }
 0x346   : > { %v1760_v8 = vpop.eup %1335  ;;  %v418_v9 = vmul.f32 1.442695, %v415_v7  ;;  %v1281_v10 = vpop.permute.xlu1 %1280 }
 0x347   : > { %v420_v11 = vsel %vm201_vm1, %v1760_v8, 0.0  ;;  %v1282_v12 = vunpack.i.l.bf16 %v1281_v10  ;;  %v1283_v13 = vunpack.i.h.bf16 %v1281_v10 }
 0x348   : > { %1337 = vpow2.f32 %v418_v9  ;;  %421 = vadd.xlane.f32.xlu1 %v420_v11 }
 0x349   : > { %459 = vmatpush.msrb.mxu3 %v1282_v12 }
 0x34b   : > { %v535_v14 = vpop.xlane.xlu2 %534  ;;  %460 = vmatpush.msrb.mxu3 %v1283_v13 }
 0x34c   : > { %1339 = vrcp.f32 %v535_v14 }
 0x34e   : > { %v1764_v15 = vpop.eup %1337  ;;  %v1291_v17 = vpop.permute.xlu1 %1290 }
 0x34f   : > { %v1292_v18 = vunpack.i.l.bf16 %v1291_v17  ;;  %v423_v19 = vsel %vm201_vm1, %v1764_v15, 0.0  ;;  %v1293_v20 = vunpack.i.h.bf16 %v1291_v17 }
 0x350   : > { %424 = vadd.xlane.f32.xlu2 %v423_v19 }
 0x351   : > { %679 = vmatpush.msra.mxu3 %v1292_v18 }
 0x352   : > { %v1340_v22 = vpop.eup %1339 }
 0x353   : > { %680 = vmatpush.msra.mxu3 %v1293_v20  ;;  %v539_v24 = vmul.f32 %v1340_v22, %v1711_v33 }
 0x355   : > { %1176 = vst.msk [vmem:[%s1637_s25 + $0x38] sm:$0xff] %vm201_vm1, %v539_v24 }
 0x35c   : > { %v630_v25 = vpop.xlane.xlu0 %629 }
 0x35d   : > { %v634_v26 = vsub.f32 %v1719_v35, %v630_v25  ;;  %v964_v35 = vsub.f32 %v1685_v16, %v960_v63 }
 0x35f   : > { %v636_v27 = vmul.f32 1.442695, %v634_v26  ;;  %v966_v38 = vmul.f32 1.442695, %v964_v35 }
 0x361   : > { %1341 = vpow2.f32 %v636_v27  ;;  %1295 = vrot.lane.b32.xlu1 %v1695_v23, %s1447_s8 }
 0x367   : > { %v1774_v28 = vpop.eup %1341 }
 0x368   : > { %v640_v31 = vsel %vm201_vm1, %v1774_v28, 0.0 }
 0x369   : > { %641 = vadd.xlane.f32.xlu0 %v640_v31 }
 0x36f   : > { %v1286_v32 = vpop.permute.xlu0 %1285 }
 0x370   : > { %v1287_v29 = vunpack.i.l.bf16 %v1286_v32  ;;  %v1288_v30 = vunpack.i.h.bf16 %v1286_v32 }
 0x372   : > { %569 = vmatpush.msrb.mxu2 %v1287_v29 }
 0x374   : > { %570 = vmatpush.msrb.mxu2 %v1288_v30 }
 0x375   : > { %1177 = vmatmul.msk.f32.vlgmr.msrb.gmra.mxu2 %vm201_vm1, %v538_v2 }
 0x379   : > { %v633_v33 = vpop.xlane.xlu1 %632 }
 0x37a   : > { %v635_v34 = vsub.f32 %v1725_v37, %v633_v33 }
 0x37c   : > { %v638_v36 = vmul.f32 1.442695, %v635_v34 }
 0x37d   : > { %1178 = vmatmul.msk.f32.gmra.mxu2 %vm201_vm1, %v539_v24 }
 0x37e   : > { %1343 = vpow2.f32 %v638_v36 }
 0x37f   : > { %1345 = vpow2.f32 %v966_v38 }
 0x384   : > { %v1782_v39 = vpop.eup %1343 }
 0x385   : > { %v643_v40 = vsel %vm201_vm1, %v1782_v39, 0.0  ;;  %v1786_v42 = vpop.eup %1345 }
 0x386   : > { %v752_v41 = vpop.xlane.xlu2 %751  ;;  %644 = vadd.xlane.f32.xlu2 %v643_v40  ;;  %v970_v16 = vsel %vm201_vm1, %v1786_v42, 0.0 }
 0x387   : > { %1347 = vrcp.f32 %v752_v41 }
 0x38d   : > { %v1348_v37 = vpop.eup %1347 }
 0x38e   : > { %v758_v44 = vmul.f32 %v1348_v37, %v1729_v43  ;;  %v850_v45 = vpop.xlane.xlu2 %849  ;;  %971 = vadd.xlane.f32.xlu2 %v970_v16 }
 0x38f   : > { %v854_v47 = vsub.f32 %v1733_v46, %v850_v45 }
 0x390   : > { %1191 = vst.msk [vmem:[%s1637_s25 + $0x50] sm:$0xff] %vm201_vm1, %v758_v44 }
 0x391   : > { %v856_v48 = vmul.f32 1.442695, %v854_v47 }
 0x393   : > { %1349 = vpow2.f32 %v856_v48 }
 0x396   : > { %v853_v49 = vpop.xlane.xlu2 %852 }
 0x397   : > { %v855_v50 = vsub.f32 %v1740_v52, %v853_v49 }
 0x399   : > { %v1795_v51 = vpop.eup %1349  ;;  %v858_v53 = vmul.f32 1.442695, %v855_v50 }
 0x39a   : > { %v860_v54 = vsel %vm201_vm1, %v1795_v51, 0.0 }
 0x39b   : > { %1351 = vpow2.f32 %v858_v53  ;;  %861 = vadd.xlane.f32.xlu1 %v860_v54 }
 0x39e   : > { %v755_v43 = vpop.xlane.xlu2 %754 }
 0x39f   : > { %1353 = vrcp.f32 %v755_v43 }
 0x3a1   : > { %v1799_v55 = vpop.eup %1351 }
 0x3a2   : > { %v863_v46 = vsel %vm201_vm1, %v1799_v55, 0.0 }
 0x3a3   : > { %864 = vadd.xlane.f32.xlu0 %v863_v46 }
 0x3a5   : > { %v1354_v56 = vpop.eup %1353 }
 0x3a6   : > { %1300 = vrot.lane.b32.xlu2 %v1695_v23, %s1450_s17  ;;  %v759_v52 = vmul.f32 %v1354_v56, %v1745_v57 }
 0x3a8   : > { %1192 = vst.msk [vmem:[%s1637_s25 + $0x58] sm:$0xff] %vm201_vm1, %v759_v52 }
 0x3b7   : > { %1305 = vrot.lane.b32.xlu0 %v1695_v23, %s1451_s22  ;;  %s1393_s22 = scalar_lea.hbm %s1915_s2, 256 }
 0x3ba   : > { %v352_v58 = vpop.f32.mrf.mxu3 }
 0x3bb   : > { %360 = vrot.lane.b32.xlu1 %v352_v58, %s1449_s16  ;;  %v422_v59 = vpop.xlane.xlu1 %421 }
 0x3bc   : > { %1355 = vrcp.f32 %v422_v59 }
 0x3c2   : > { %v1356_v62 = vpop.eup %1355  ;;  %v355_v63 = vpop.f32.mrf.mxu3 }
 0x3c3   : > { %362 = vrot.lane.b32.xlu0 %v355_v63, %s1449_s16  ;;  %v425_v57 = vpop.xlane.xlu2 %424  ;;  %v428_v0 = vmul.f32 %v1356_v62, %v1760_v8 }
 0x3c4   : > { %1357 = vrcp.f32 %v425_v57 }
 0x3c5   : > { %1359 = vpow2.f32 %v968_v61  ;;  %1167 = vst.msk [vmem:[%s1637_s25 + $0x20] sm:$0xff] %vm201_vm1, %v428_v0  ;;  %1169 = vmatmul.msk.f32.vlgmr.msrb.gmra.mxu3 %vm201_vm1, %v428_v0 }
 0x3ca   : > { %v1358_v23 = vpop.eup %1357 }
 0x3cb   : > { %v1818_v1 = vpop.eup %1359  ;;  %v429_v2 = vmul.f32 %v1358_v23, %v1764_v15 }
 0x3cc   : > { %v973_v21 = vsel %vm201_vm1, %v1818_v1, 0.0 }
 0x3cd   : > { %1168 = vst.msk [vmem:[%s1637_s25 + $0x28] sm:$0xff] %vm201_vm1, %v429_v2  ;;  %1170 = vmatmul.msk.f32.gmra.mxu3 %vm201_vm1, %v429_v2 }
 0x3cf   : > { %974 = vadd.xlane.f32.xlu2 %v973_v21 }
 0x3d3   : > { %v1296_v3 = vpop.permute.xlu1 %1295 }
 0x3d4   : > { %v1298_v4 = vunpack.i.h.bf16 %v1296_v3  ;;  %v1297_v5 = vunpack.i.l.bf16 %v1296_v3 }
 0x3d6   : > { %789 = vmatpush.msra.mxu2 %v1297_v5 }
 0x3d8   : > { %790 = vmatpush.msra.mxu2 %v1298_v4 }
 0x3d9   : > { %1193 = vmatmul.msk.f32.vlgmr.msra.gmra.mxu2 %vm201_vm1, %v758_v44 }
 0x3dc   : > { %v642_v6 = vpop.xlane.xlu0 %641 }
 0x3dd   : > { %1361 = vrcp.f32 %v642_v6 }
 0x3e1   : > { %1194 = vmatmul.msk.f32.gmra.mxu2 %vm201_vm1, %v759_v52 }
 0x3e3   : > { %v1362_v7 = vpop.eup %1361 }
 0x3e4   : > { %v648_v8 = vmul.f32 %v1362_v7, %v1774_v28 }
 0x3e6   : > { %1183 = vst.msk [vmem:[%s1637_s25 + $0x40] sm:$0xff] %vm201_vm1, %v648_v8  ;;  %1185 = vmatmul.msk.f32.vlgmr.msra.gmra.mxu3 %vm201_vm1, %v648_v8 }
 0x3f8   : > { %v572_v9 = vpop.f32.mrf.mxu2 }
 0x3f9   : > { %580 = vrot.lane.b32.xlu1 %v572_v9, %s1442_s3  ;;  %v645_v10 = vpop.xlane.xlu2 %644 }
 0x3fa   : > { %1363 = vrcp.f32 %v645_v10 }
 0x400   : > { %v1364_v11 = vpop.eup %1363  ;;  %v575_v12 = vpop.f32.mrf.mxu2 }
 0x401   : > { %582 = vrot.lane.b32.xlu0 %v575_v12, %s1442_s3  ;;  %v972_v13 = vpop.xlane.xlu2 %971  ;;  %v649_v14 = vmul.f32 %v1364_v11, %v1782_v39  ;;  %s1049_s3 = scalar_lea.hbm %s1915_s2, %s1218_s28 }
 0x402   : > { %1365 = vrcp.f32 %v972_v13  ;;  %s1052_s5 = sshll.u32 %s1049_s3, 4  ;;  %s1053_s5 = int_to_ptr.hbm [resolvable:$true] %s1052_s5 }
 0x403   : > { %1184 = vst.msk [vmem:[%s1637_s25 + $0x48] sm:$0xff] %vm201_vm1, %v649_v14  ;;  %1186 = vmatmul.msk.f32.gmra.mxu3 %vm201_vm1, %v649_v14  ;;  %s1387_s8 = sshra.s32 %s1053_s5, 4  ;;  %s1388_s8 = int_to_ptr.hbm [resolvable:$true] %s1387_s8 }
 0x404   : > { %p1394_p0 = scmp.lt.s32.totalorder %s1388_s8, %s1915_s2 }
 0x408   : > { %v1366_v15 = vpop.eup %1365 }
 0x409   : > { %v978_v17 = vmul.f32 %v1366_v15, %v1786_v42  ;;  %v1301_v18 = vpop.permute.xlu2 %1300 }
 0x40a   : > { %v1302_v19 = vunpack.i.l.bf16 %v1301_v18  ;;  %v1303_v20 = vunpack.i.h.bf16 %v1301_v18 }
 0x40b   : > { %1207 = vst.msk [vmem:[%s1637_s25 + $0x70] sm:$0xff] %vm201_vm1, %v978_v17 }
 0x40c   : > { %899 = vmatpush.msrb.mxu3 %v1302_v19 }
 0x40e   : > { %v862_v22 = vpop.xlane.xlu1 %861  ;;  %900 = vmatpush.msrb.mxu3 %v1303_v20 }
 0x40f   : > { %1367 = vrcp.f32 %v862_v22 }
 0x415   : > { %v1368_v24 = vpop.eup %1367 }
 0x416   : > { %v868_v25 = vmul.f32 %v1368_v24, %v1795_v51  ;;  %v865_v26 = vpop.xlane.xlu0 %864 }
 0x417   : > { %1369 = vrcp.f32 %v865_v26 }
 0x418   : > { %1199 = vst.msk [vmem:[%s1637_s25 + $0x60] sm:$0xff] %vm201_vm1, %v868_v25  ;;  %1201 = vmatmul.msk.f32.vlgmr.msrb.gmra.mxu3 %vm201_vm1, %v868_v25 }
 0x41d   : > { %v1370_v27 = vpop.eup %1369 }
 0x41e   : > { %v869_v28 = vmul.f32 %v1370_v27, %v1799_v55 }
 0x420   : > { %1200 = vst.msk [vmem:[%s1637_s25 + $0x68] sm:$0xff] %vm201_vm1, %v869_v28  ;;  %1202 = vmatmul.msk.f32.gmra.mxu3 %vm201_vm1, %v869_v28 }
 0x429   : > { %v1306_v31 = vpop.permute.xlu0 %1305 }
 0x42a   : > { %v1308_v32 = vunpack.i.h.bf16 %v1306_v31  ;;  %v1307_v29 = vunpack.i.l.bf16 %v1306_v31 }
 0x42c   : > { %1009 = vmatpush.msrb.mxu2 %v1307_v29 }
 0x42d   : > { %v361_v30 = vpop.permute.xlu1 %360 }
 0x42e   : > { %367 = vst.msk [vmem:[%s1668_s27] sm:$0xff] %vm366_vm2, %v361_v30  ;;  %1010 = vmatpush.msrb.mxu2 %v1308_v32 }
 0x42f   : > { %1209 = vmatmul.msk.f32.vlgmr.msrb.gmra.mxu2 %vm201_vm1, %v978_v17 }
 0x435   : > { %v363_v33 = vpop.permute.xlu0 %362 }
 0x436   : > { %368 = vst.msk [vmem:[%s1668_s27 + $0x8] sm:$0xff] %vm366_vm2, %v363_v33 }
 0x442   : > { %v975_v34 = vpop.xlane.xlu2 %974 }
 0x443   : > { %1371 = vrcp.f32 %v975_v34 }
 0x448   : > { %v462_v35 = vpop.f32.mrf.mxu3 }
 0x449   : > { %v1372_v36 = vpop.eup %1371  ;;  %470 = vrot.lane.b32.xlu0 %v462_v35, %s1448_s14 }
 0x44a   : > { %v979_v38 = vmul.f32 %v1372_v36, %v1818_v1 }
 0x44c   : > { %1208 = vst.msk [vmem:[%s1637_s25 + $0x78] sm:$0xff] %vm201_vm1, %v979_v38  ;;  %1210 = vmatmul.msk.f32.gmra.mxu2 %vm201_vm1, %v979_v38 }
 0x450   : > { %v465_v39 = vpop.f32.mrf.mxu3 }
 0x451   : > { %472 = vrot.lane.b32.xlu0 %v465_v39, %s1448_s14  ;;  %s1389_s14 = scalar_lea.hbm %s1388_s8, 128 }
 0x452   : > { %p1390_p11 = scmp.ne.s32.totalorder %s1388_s8, %s1389_s14  ;;  %p1395_p1 = scmp.lt.s32.totalorder %s1393_s22, %s1389_s14 }
 0x454   : > { %p1391_p12 = pnand %p1390_p11, %p1506_p5  ;;  %p1396_p2 = por %p1395_p1, %p1394_p0 }
 0x456   : > { %p1392_p13 = pneg %p1391_p12 }
 0x458   : > { %p1397_p3 = pnand %p1396_p2, %p1392_p13 }
 0x45c   : > { %v792_v40 = vpop.f32.mrf.mxu2 }
 0x45d   : > { %800 = vrot.lane.b32.xlu2 %v792_v40, %s1440_s29 }
 0x464   : > { %v795_v41 = vpop.f32.mrf.mxu2 }
 0x465   : > { %802 = vrot.lane.b32.xlu1 %v795_v41, %s1440_s29 }
 0x469   : > { %v682_v42 = vpop.f32.mrf.mxu3 }
 0x46b   : > { %v581_v49 = vpop.permute.xlu1 %580 }
 0x46d   : > { %690 = vrot.lane.b32.xlu1 %v682_v42, %s1443_s4 }
 0x473   : > { %v583_v47 = vpop.permute.xlu0 %582 }
 0x486   : > { %v685_v37 = vpop.f32.mrf.mxu3 }
 0x487   : > { %692 = vrot.lane.b32.xlu0 %v685_v37, %s1443_s4  ;;  %s1050_s4 = sshll.u32 %s1637_s25, 4  ;;  %s1051_s4 = int_to_ptr.vmem [resolvable:$true] %s1050_s4 }
 0x49b   : > { %v902_v16 = vpop.f32.mrf.mxu3 }
 0x49c   : > { %910 = vrot.lane.b32.xlu0 %v902_v16, %s1445_s6 }
 0x4a3   : > { %v905_v44 = vpop.f32.mrf.mxu3 }
 0x4a4   : > { %912 = vrot.lane.b32.xlu1 %v905_v44, %s1445_s6  ;;  %s1922_s6 = sand.u32 1, %s1427_s10  }
 0x4a5   : > { %s1035_s7 = scalar_lea.sflag [#allocation3], %s1922_s6 }
 0x4b2   : > { %v1012_v45 = vpop.f32.mrf.mxu2 }
 0x4b3   : > { %1020 = vrot.lane.b32.xlu0 %v1012_v45, %s1921_s21 }
 0x4bb   : > { %v471_v48 = vpop.permute.xlu0 %470 }
 0x4bc   : > { %477 = vst.msk [vmem:[%s1668_s27] sm:$0xff] %vm476_vm3, %v471_v48 }
 0x4bd   : > { %587 = vst.msk [vmem:[%s1668_s27] sm:$0xff] %vm586_vm4, %v581_v49 }
 0x4c3   : > { %v473_v50 = vpop.permute.xlu0 %472 }
 0x4c4   : > { %478 = vst.msk [vmem:[%s1668_s27 + $0x8] sm:$0xff] %vm476_vm3, %v473_v50 }
 0x4c5   : > { %588 = vst.msk [vmem:[%s1668_s27 + $0x8] sm:$0xff] %vm586_vm4, %v583_v47 }
 0x4c6   : > { %1400 = shalt.err (!%p1397_p3)
}
 0x4c7   : > { %s1452_s26 = smov 128   ;;  %vm696_vm5 = vcmask 326912   ;;  %vm806_vm6 = vcmask 392512   ;;  %v801_v43 = vpop.permute.xlu2 %800  ;;  %vm916_vm7 = vcmask 458112   ;;  %vm1026_vm8 = vcmask 523712  }
 0x4c8   : > { %1219 = dma.vmem_to_hbm [thread:$0]  (%p1506_p5), %s1051_s4, 2048, %s1053_s5, %s1035_s7, %s1452_s26, %s1452_s26, %s1449_s16  }
 0x4cf   : > { %v1015_v51 = vpop.f32.mrf.mxu2 }
 0x4d0   : > { %1022 = vrot.lane.b32.xlu1 %v1015_v51, %s1921_s21 }
 0x4d7   : > { %v803_v53 = vpop.permute.xlu1 %802 }
 0x4df   : > { %v691_v54 = vpop.permute.xlu1 %690 }
 0x4e0   : > { %697 = vst.msk [vmem:[%s1668_s27] sm:$0xff] %vm696_vm5, %v691_v54 }
 0x4e1   : > { %807 = vst.msk [vmem:[%s1668_s27] sm:$0xff] %vm806_vm6, %v801_v43 }
 0x4f9   : > { %v693_v55 = vpop.permute.xlu0 %692 }
 0x4fa   : > { %698 = vst.msk [vmem:[%s1668_s27 + $0x8] sm:$0xff] %vm696_vm5, %v693_v55 }
 0x4fb   : > { %808 = vst.msk [vmem:[%s1668_s27 + $0x8] sm:$0xff] %vm806_vm6, %v803_v53 }
 0x50e   : > { %v911_v46 = vpop.permute.xlu0 %910 }
 0x50f   : > { %917 = vst.msk [vmem:[%s1668_s27] sm:$0xff] %vm916_vm7, %v911_v46 }
 0x516   : > { %v913_v56 = vpop.permute.xlu1 %912 }
 0x517   : > { %918 = vst.msk [vmem:[%s1668_s27 + $0x8] sm:$0xff] %vm916_vm7, %v913_v56 }
 0x525   : > { %v1021_v52 = vpop.permute.xlu0 %1020 }
 0x526   : > { %1027 = vst.msk [vmem:[%s1668_s27] sm:$0xff] %vm1026_vm8, %v1021_v52 }
 0x542   : > { %v1023_v58 = vpop.permute.xlu1 %1022 }
 0x543   : > { %1028 = vst.msk [vmem:[%s1668_s27 + $0x8] sm:$0xff] %vm1026_vm8, %v1023_v58 }
 0x544 PF: > { %p1225_p4 = scmp.ge.s32.totalorder %s1435_s12, 2  ;;  %s1075_s19 = sand.u32 1, %s1423_s9  }
 0x545   : > { %s1076_s16 = scalar_lea.sflag [#allocation3], %s1075_s19 }
 0x546   : > { %p1222_p5 = pnand %p1225_p4, %p1510_p6 }
 0x548   : > { %p1223_p7 = pneg %p1222_p5 }
 0x54a   : > { %1418 = dma.done.wait (%p1223_p7), %s1076_s16, 2048  }
 0x54b   : > { %1420 = vsyncadd (%p1223_p7), %s1076_s16, 4294965248  ;;  %p13_p8 = scmp.ge.s32.totalorder %s1493_s15, 4   ;;  %s1923_s9 = smov %s1427_s10 }
 0x54c   : > { %s1924_s10 = smov %s1431_s11  ;;  %s1925_s11 = smov %s1504_s18 }
 0x54d   : > { %s1926_s12 = smov %s1493_s15  ;;  %15 = sbr.rel (!%p13_p8) target bundleno = 3 (0x3), region = 78 }
 0x552   :  { %1082 = vsyncpa [#allocation3], 1 }
 0x553   :  { %1084 = vsyncpa [#allocation3 + $0x1], 1 }

</bundles_post_ra>
